<compile_context>
chip_gen: v5e
topology: v5e:2x2
jax: 0.10.0
libtpu: 0.0.40
codegen_flags: <defaults>
</compile_context>

<pallas_src>
import functools
import math

import jax
import jax.numpy as jnp
from jax.experimental import pallas as pl
from jax.experimental.pallas import tpu as pltpu


CFG = dict(
    vocab_size=100,
    type_vocab_size=2,
    max_position=16,
    hidden=32,
    num_heads=2,
    head_dim=16,
    intermediate=64,
    num_layers=2,
    num_classes=3,
)
LOGIT_PAD = 128   # pad classifier output to a lane-dense width
LN_EPS = 1e-12


# ----------------------------------------------------------------------------
# In-kernel helpers (all f32 math)
# ----------------------------------------------------------------------------
def _layernorm_f32(x, g, b, eps):
    mu = jnp.mean(x, axis=-1, keepdims=True)
    xc = x - mu
    var = jnp.mean(xc * xc, axis=-1, keepdims=True)
    return xc * jax.lax.rsqrt(var + eps) * g + b


def _gelu_f32(x):
    # TODO(synk): HF BERT default is exact erf-GELU; tanh-approx used for robust
    # Mosaic lowering (EUP tanh). Difference is negligible at these magnitudes.
    c = math.sqrt(2.0 / math.pi)
    return 0.5 * x * (1.0 + jnp.tanh(c * (x + 0.044715 * x * x * x)))


# ----------------------------------------------------------------------------
# The single fused kernel
# ----------------------------------------------------------------------------
def _fused_forward_kernel(
        emb_ref, mask_ref, emb_g_ref, emb_b_ref,
        wqkv_ref, bqkv_ref, wo_ref, bo_ref,
        ln1_g_ref, ln1_b_ref, wi_ref, bi_ref,
        wo2_ref, bo2_ref, ln2_g_ref, ln2_b_ref,
        pool_w_ref, pool_b_ref,
        c1_w_ref, c1_b_ref, c2_w_ref, c2_b_ref, c3_w_ref, c3_b_ref,
        logits_ref, *, num_layers, num_heads, head_dim, batch, seq, eps):
    """Embedding LN -> encoder layers -> pooler -> classifier, all in VMEM."""
    H = num_heads * head_dim
    bf16 = jnp.bfloat16

    # ---- embedding LayerNorm (prologue; emb sum comes from XLA gathers) ----
    x = _layernorm_f32(emb_ref[...], emb_g_ref[...], emb_b_ref[...], eps)  # (BS,H)
    mask = mask_ref[...]                                   # (BS, BS) additive

    # ---- transformer encoder (unrolled over stacked-weight leading axis) ----
    for l in range(num_layers):
        # fused QKV projection: one bf16 GEMM, f32 accumulation
        qkv = jnp.dot(x.astype(bf16), wqkv_ref[l],
                      preferred_element_type=jnp.float32) + bqkv_ref[l]  # (BS,3H)

        # attention over the flattened batch; cross-batch pairs are masked out
        ctx_heads = []
        for h in range(num_heads):
            lo = h * head_dim
            qh = qkv[:, lo:lo + head_dim].astype(bf16)                # (BS,Dh)
            kh = qkv[:, H + lo:H + lo + head_dim].astype(bf16)
            vh = qkv[:, 2 * H + lo:2 * H + lo + head_dim].astype(bf16)
            # q @ k^T via dot_general (no explicit transpose); scale pre-folded
            s = jax.lax.dot_general(qh, kh, (((1,), (1,)), ((), ())),
                                    preferred_element_type=jnp.float32)
            s = s + mask
            mx = jnp.max(s, axis=-1, keepdims=True)
            e = jnp.exp(s - mx)
            p = e * pl.reciprocal(jnp.sum(e, axis=-1, keepdims=True), approx=True)
            ctx_heads.append(jnp.dot(p.astype(bf16), vh,
                                     preferred_element_type=jnp.float32))
        ctx = jnp.concatenate(ctx_heads, axis=-1)                     # (BS,H)

        attn = jnp.dot(ctx.astype(bf16), wo_ref[l],
                       preferred_element_type=jnp.float32) + bo_ref[l]
        h1 = _layernorm_f32(attn + x, ln1_g_ref[l], ln1_b_ref[l], eps)

        inter = jnp.dot(h1.astype(bf16), wi_ref[l],
                        preferred_element_type=jnp.float32) + bi_ref[l]
        inter = _gelu_f32(inter)
        ffn = jnp.dot(inter.astype(bf16), wo2_ref[l],
                      preferred_element_type=jnp.float32) + bo2_ref[l]
        x = _layernorm_f32(ffn + h1, ln2_g_ref[l], ln2_b_ref[l], eps)

    # ---- pooler (dense + tanh on [CLS] rows of the flattened layout) ----
    cls = jnp.concatenate([x[b * seq:b * seq + 1, :] for b in range(batch)],
                          axis=0)                                      # (B,H)
    pooled = jnp.tanh(jnp.dot(cls.astype(bf16), pool_w_ref[...],
                              preferred_element_type=jnp.float32) + pool_b_ref[...])

    # ---- classifier MLP: H -> 512 -> 128 -> 128(padded logits) ----
    hcls = jnp.maximum(jnp.dot(pooled.astype(bf16), c1_w_ref[...],
                               preferred_element_type=jnp.float32) + c1_b_ref[...],
                       0.0)
    hcls = jnp.maximum(jnp.dot(hcls.astype(bf16), c2_w_ref[...],
                               preferred_element_type=jnp.float32) + c2_b_ref[...],
                       0.0)
    # Lane-dense (128-wide) padded logits; the ONLY HBM store of the kernel.
    logits_ref[...] = jnp.dot(hcls.astype(bf16), c3_w_ref[...],
                              preferred_element_type=jnp.float32) + c3_b_ref[...]


# ----------------------------------------------------------------------------
# Pallas wrapper (single pallas_call, no grid, everything VMEM-resident)
# ----------------------------------------------------------------------------
def fused_forward(emb_flat, mask_add, params, *, batch, seq):
    kernel = functools.partial(
        _fused_forward_kernel,
        num_layers=CFG["num_layers"], num_heads=CFG["num_heads"],
        head_dim=CFG["head_dim"], batch=batch, seq=seq, eps=LN_EPS)

    args = (
        emb_flat, mask_add, params["emb_ln_g"], params["emb_ln_b"],
        params["wqkv"], params["bqkv"], params["wo"], params["bo"],
        params["ln1_g"], params["ln1_b"], params["wi"], params["bi"],
        params["wo2"], params["bo2"], params["ln2_g"], params["ln2_b"],
        params["pool_w"], params["pool_b"],
        params["c1_w"], params["c1_b"], params["c2_w"], params["c2_b"],
        params["c3_w"], params["c3_b"],
    )
    vmem_spec = pl.BlockSpec(memory_space=pltpu.MemorySpace.VMEM)
    return pl.pallas_call(
        kernel,
        out_shape=jax.ShapeDtypeStruct((batch, LOGIT_PAD), jnp.float32),
        in_specs=[vmem_spec] * len(args),
        out_specs=vmem_spec,
    )(*args)


# ----------------------------------------------------------------------------
# Parameter init (per-layer weights stacked on a leading L axis)
# ----------------------------------------------------------------------------
def init_params(key):
    H, I, L = CFG["hidden"], CFG["intermediate"], CFG["num_layers"]
    nC = CFG["num_classes"]
    scale = 1.0 / math.sqrt(CFG["head_dim"])

    def dense(k, fan_in, fan_out):
        w = 0.02 * jax.random.normal(k, (fan_in, fan_out), jnp.float32)
        b = jnp.zeros((1, fan_out), jnp.float32)
        return w, b

    keys = jax.random.split(key, 8 + 6 * L)
    ki = iter(keys)

    p = {
        "word_emb": 0.02 * jax.random.normal(next(ki), (CFG["vocab_size"], H), jnp.float32),
        "pos_emb": 0.02 * jax.random.normal(next(ki), (CFG["max_position"], H), jnp.float32),
        "type_emb": 0.02 * jax.random.normal(next(ki), (CFG["type_vocab_size"], H), jnp.float32),
        "emb_ln_g": jnp.ones((1, H), jnp.float32),
        "emb_ln_b": jnp.zeros((1, H), jnp.float32),
    }

    stacks = {k: [] for k in ("wqkv", "bqkv", "wo", "bo", "ln1_g", "ln1_b",
                              "wi", "bi", "wo2", "bo2", "ln2_g", "ln2_b")}
    for _ in range(L):
        wq, bq = dense(next(ki), H, H)
        wk, bk = dense(next(ki), H, H)
        wv, bv = dense(next(ki), H, H)
        wo, bo = dense(next(ki), H, H)
        wi, bi = dense(next(ki), H, I)
        wo2, bo2 = dense(next(ki), I, H)
        # Fold 1/sqrt(head_dim) into the Q projection (weights + bias).
        stacks["wqkv"].append(jnp.concatenate([wq * scale, wk, wv], axis=1))
        stacks["bqkv"].append(jnp.concatenate([bq * scale, bk, bv], axis=1))
        stacks["wo"].append(wo)
        stacks["bo"].append(bo)
        stacks["ln1_g"].append(jnp.ones((1, H), jnp.float32))
        stacks["ln1_b"].append(jnp.zeros((1, H), jnp.float32))
        stacks["wi"].append(wi)
        stacks["bi"].append(bi)
        stacks["wo2"].append(wo2)
        stacks["bo2"].append(bo2)
        stacks["ln2_g"].append(jnp.ones((1, H), jnp.float32))
        stacks["ln2_b"].append(jnp.zeros((1, H), jnp.float32))

    bf16_keys = ("wqkv", "wo", "wi", "wo2")
    for k, v in stacks.items():
        arr = jnp.stack(v, axis=0)
        p[k] = arr.astype(jnp.bfloat16) if k in bf16_keys else arr

    pw, pb = dense(next(ki), H, H)
    p["pool_w"], p["pool_b"] = pw.astype(jnp.bfloat16), pb
    # classifier: Linear(H,512) ReLU Dropout Linear(512,128) ReLU Dropout Linear(128,C)
    c1w, c1b = dense(next(ki), H, 512)
    c2w, c2b = dense(next(ki), 512, 128)
    c3w, c3b = dense(next(ki), 128, nC)
    p["c1_w"], p["c1_b"] = c1w.astype(jnp.bfloat16), c1b
    p["c2_w"], p["c2_b"] = c2w.astype(jnp.bfloat16), c2b
    # pad the final projection to a lane-dense 128-wide output
    c3w_p = jnp.zeros((128, LOGIT_PAD), jnp.float32).at[:, :nC].set(c3w)
    c3b_p = jnp.zeros((1, LOGIT_PAD), jnp.float32).at[:, :nC].set(c3b)
    p["c3_w"], p["c3_b"] = c3w_p.astype(jnp.bfloat16), c3b_p
    return p


# ----------------------------------------------------------------------------
# Forward (embedding gathers + mask construction are XLA glue; one Pallas call)
# ----------------------------------------------------------------------------
def forward(params, input_ids, attention_mask, token_type_ids):
    B, S = input_ids.shape
    H = CFG["hidden"]

    # embeddings (table gathers + adds fuse in XLA)
    emb = (params["word_emb"][input_ids]
           + params["pos_emb"][:S][None, :, :]
           + params["type_emb"][token_type_ids]).astype(jnp.float32)   # (B,S,H)
    emb_flat = emb.reshape(B * S, H)

    # combined additive mask over the flattened batch:
    #   allowed iff same batch element AND key not padded; else -1e9
    batch_id = jnp.repeat(jnp.arange(B), S)                            # (B*S,)
    same_batch = batch_id[:, None] == batch_id[None, :]
    key_ok = attention_mask.reshape(B * S).astype(jnp.float32) > 0.5
    mask_add = jnp.where(same_batch & key_ok[None, :], 0.0, -1e9).astype(jnp.float32)

    logits_pad = fused_forward(emb_flat, mask_add, params, batch=B, seq=S)
    return logits_pad[:, :CFG["num_classes"]]


if __name__ == "__main__":
    B, S = 2, 8
    params = init_params(jax.random.PRNGKey(42))

    key = jax.random.PRNGKey(0)
    k_ids, k_type = jax.random.split(key)
    input_ids = jax.random.randint(k_ids, (B, S), 0, CFG["vocab_size"], dtype=jnp.int32)
    token_type_ids = jnp.concatenate(
        [jnp.zeros((B, S // 2), jnp.int32), jnp.ones((B, S - S // 2), jnp.int32)], axis=1
    )
    attention_mask = jnp.ones((B, S), jnp.int32)
    attention_mask = attention_mask.at[0, -2:].set(0)  # pad tail of first example

    logits = forward(params, input_ids, attention_mask, token_type_ids)
    logits = jax.block_until_ready(logits)
    assert logits.shape == (B, CFG["num_classes"])
    assert bool(jnp.all(jnp.isfinite(logits)))
    print("KERNEL_OK")
</pallas_src>

<mosaic_0001>
module attributes {stable_mosaic.version = 11 : i64} {
  func.func @_fused_forward_kernel(%arg0: memref<16x32xf32, #tpu.memory_space<vmem>>, %arg1: memref<16x16xf32, #tpu.memory_space<vmem>>, %arg2: memref<1x32xf32, #tpu.memory_space<vmem>>, %arg3: memref<1x32xf32, #tpu.memory_space<vmem>>, %arg4: memref<2x32x96xbf16, #tpu.memory_space<vmem>>, %arg5: memref<2x1x96xf32, #tpu.memory_space<vmem>>, %arg6: memref<2x32x32xbf16, #tpu.memory_space<vmem>>, %arg7: memref<2x1x32xf32, #tpu.memory_space<vmem>>, %arg8: memref<2x1x32xf32, #tpu.memory_space<vmem>>, %arg9: memref<2x1x32xf32, #tpu.memory_space<vmem>>, %arg10: memref<2x32x64xbf16, #tpu.memory_space<vmem>>, %arg11: memref<2x1x64xf32, #tpu.memory_space<vmem>>, %arg12: memref<2x64x32xbf16, #tpu.memory_space<vmem>>, %arg13: memref<2x1x32xf32, #tpu.memory_space<vmem>>, %arg14: memref<2x1x32xf32, #tpu.memory_space<vmem>>, %arg15: memref<2x1x32xf32, #tpu.memory_space<vmem>>, %arg16: memref<32x32xbf16, #tpu.memory_space<vmem>>, %arg17: memref<1x32xf32, #tpu.memory_space<vmem>>, %arg18: memref<32x512xbf16, #tpu.memory_space<vmem>>, %arg19: memref<1x512xf32, #tpu.memory_space<vmem>>, %arg20: memref<512x128xbf16, #tpu.memory_space<vmem>>, %arg21: memref<1x128xf32, #tpu.memory_space<vmem>>, %arg22: memref<128x128xbf16, #tpu.memory_space<vmem>>, %arg23: memref<1x128xf32, #tpu.memory_space<vmem>>, %arg24: memref<2x128xf32, #tpu.memory_space<vmem>>) attributes {dimension_semantics = [], scalar_prefetch = 0 : i64, scratch_operands = 0 : i64, tpu.core_type = #tpu.core_type<tc>} {
    %c0 = arith.constant 0 : index
    %c0_0 = arith.constant 0 : index
    %0 = vector.load %arg0[%c0, %c0_0] : memref<16x32xf32, #tpu.memory_space<vmem>>, vector<16x32xf32>
    %c0_1 = arith.constant 0 : index
    %c0_2 = arith.constant 0 : index
    %1 = vector.load %arg2[%c0_1, %c0_2] : memref<1x32xf32, #tpu.memory_space<vmem>>, vector<1x32xf32>
    %c0_3 = arith.constant 0 : index
    %c0_4 = arith.constant 0 : index
    %2 = vector.load %arg3[%c0_3, %c0_4] : memref<1x32xf32, #tpu.memory_space<vmem>>, vector<1x32xf32>
    %cst = arith.constant dense<0.000000e+00> : vector<16xf32>
    %3 = vector.multi_reduction <add>, %0, %cst [1] : vector<16x32xf32> to vector<16xf32>
    %4 = vector.shape_cast %3 : vector<16xf32> to vector<16x1xf32>
    %cst_5 = arith.constant 3.200000e+01 : f32
    %5 = vector.broadcast %cst_5 : f32 to vector<16x1xf32>
    %6 = arith.divf %4, %5 : vector<16x1xf32>
    %7 = vector.broadcast %6 : vector<16x1xf32> to vector<16x32xf32>
    %8 = arith.subf %0, %7 : vector<16x32xf32>
    %9 = arith.mulf %8, %8 : vector<16x32xf32>
    %cst_6 = arith.constant dense<0.000000e+00> : vector<16xf32>
    %10 = vector.multi_reduction <add>, %9, %cst_6 [1] : vector<16x32xf32> to vector<16xf32>
    %11 = vector.shape_cast %10 : vector<16xf32> to vector<16x1xf32>
    %cst_7 = arith.constant 3.200000e+01 : f32
    %12 = vector.broadcast %cst_7 : f32 to vector<16x1xf32>
    %13 = arith.divf %11, %12 : vector<16x1xf32>
    %cst_8 = arith.constant 9.99999996E-13 : f32
    %14 = vector.broadcast %cst_8 : f32 to vector<16x1xf32>
    %15 = arith.addf %13, %14 : vector<16x1xf32>
    %16 = math.rsqrt %15 : vector<16x1xf32>
    %17 = vector.broadcast %16 : vector<16x1xf32> to vector<16x32xf32>
    %18 = arith.mulf %8, %17 : vector<16x32xf32>
    %19 = vector.broadcast %1 : vector<1x32xf32> to vector<16x32xf32>
    %20 = arith.mulf %18, %19 : vector<16x32xf32>
    %21 = vector.broadcast %2 : vector<1x32xf32> to vector<16x32xf32>
    %22 = arith.addf %20, %21 : vector<16x32xf32>
    %c0_9 = arith.constant 0 : index
    %c0_10 = arith.constant 0 : index
    %23 = vector.load %arg1[%c0_9, %c0_10] : memref<16x16xf32, #tpu.memory_space<vmem>>, vector<16x16xf32>
    %24 = arith.truncf %22 : vector<16x32xf32> to vector<16x32xbf16>
    %c0_11 = arith.constant 0 : index
    %c0_12 = arith.constant 0 : index
    %c0_13 = arith.constant 0 : index
    %25 = vector.load %arg4[%c0_11, %c0_12, %c0_13] : memref<2x32x96xbf16, #tpu.memory_space<vmem>>, vector<1x32x96xbf16>
    %26 = vector.shape_cast %25 : vector<1x32x96xbf16> to vector<32x96xbf16>
    %cst_14 = arith.constant dense<0.000000e+00> : vector<16x96xf32>
    %27 = tpu.matmul %24, %26, %cst_14 {dimension_numbers = #tpu.dot_dimension_numbers<[1], [0], [0], [1], [0, 0, 1, 1], [], []>} : vector<16x32xbf16>, vector<32x96xbf16>, vector<16x96xf32> -> vector<16x96xf32>
    %c0_15 = arith.constant 0 : index
    %c0_16 = arith.constant 0 : index
    %c0_17 = arith.constant 0 : index
    %28 = vector.load %arg5[%c0_15, %c0_16, %c0_17] : memref<2x1x96xf32, #tpu.memory_space<vmem>>, vector<1x1x96xf32>
    %29 = vector.shape_cast %28 : vector<1x1x96xf32> to vector<1x96xf32>
    %30 = vector.broadcast %29 : vector<1x96xf32> to vector<16x96xf32>
    %31 = arith.addf %27, %30 : vector<16x96xf32>
    %32 = vector.extract_strided_slice %31 {offsets = [0, 0], sizes = [16, 16], strides = [1, 1]} : vector<16x96xf32> to vector<16x16xf32>
    %33 = arith.truncf %32 : vector<16x16xf32> to vector<16x16xbf16>
    %34 = vector.extract_strided_slice %31 {offsets = [0, 32], sizes = [16, 16], strides = [1, 1]} : vector<16x96xf32> to vector<16x16xf32>
    %35 = arith.truncf %34 : vector<16x16xf32> to vector<16x16xbf16>
    %36 = vector.extract_strided_slice %31 {offsets = [0, 64], sizes = [16, 16], strides = [1, 1]} : vector<16x96xf32> to vector<16x16xf32>
    %37 = arith.truncf %36 : vector<16x16xf32> to vector<16x16xbf16>
    %cst_18 = arith.constant dense<0.000000e+00> : vector<16x16xf32>
    %38 = tpu.matmul %33, %35, %cst_18 {dimension_numbers = #tpu.dot_dimension_numbers<[1], [1], [0], [0], [0, 0, 1, 0], [], []>} : vector<16x16xbf16>, vector<16x16xbf16>, vector<16x16xf32> -> vector<16x16xf32>
    %39 = arith.addf %38, %23 : vector<16x16xf32>
    %cst_19 = arith.constant dense<0xFF800000> : vector<16xf32>
    %40 = vector.multi_reduction <maximumf>, %39, %cst_19 [1] : vector<16x16xf32> to vector<16xf32>
    %41 = vector.shape_cast %40 : vector<16xf32> to vector<16x1xf32>
    %42 = vector.broadcast %41 : vector<16x1xf32> to vector<16x16xf32>
    %43 = arith.subf %39, %42 : vector<16x16xf32>
    %44 = math.exp %43 : vector<16x16xf32>
    %cst_20 = arith.constant dense<0.000000e+00> : vector<16xf32>
    %45 = vector.multi_reduction <add>, %44, %cst_20 [1] : vector<16x16xf32> to vector<16xf32>
    %46 = vector.shape_cast %45 : vector<16xf32> to vector<16x1xf32>
    %47 = tpu.reciprocal %46 {approx = true} : vector<16x1xf32> -> vector<16x1xf32>
    %48 = vector.broadcast %47 : vector<16x1xf32> to vector<16x16xf32>
    %49 = arith.mulf %44, %48 : vector<16x16xf32>
    %50 = arith.truncf %49 : vector<16x16xf32> to vector<16x16xbf16>
    %cst_21 = arith.constant dense<0.000000e+00> : vector<16x16xf32>
    %51 = tpu.matmul %50, %37, %cst_21 {dimension_numbers = #tpu.dot_dimension_numbers<[1], [0], [0], [1], [0, 0, 1, 1], [], []>} : vector<16x16xbf16>, vector<16x16xbf16>, vector<16x16xf32> -> vector<16x16xf32>
    %52 = vector.extract_strided_slice %31 {offsets = [0, 16], sizes = [16, 16], strides = [1, 1]} : vector<16x96xf32> to vector<16x16xf32>
    %53 = arith.truncf %52 : vector<16x16xf32> to vector<16x16xbf16>
    %54 = vector.extract_strided_slice %31 {offsets = [0, 48], sizes = [16, 16], strides = [1, 1]} : vector<16x96xf32> to vector<16x16xf32>
    %55 = arith.truncf %54 : vector<16x16xf32> to vector<16x16xbf16>
    %56 = vector.extract_strided_slice %31 {offsets = [0, 80], sizes = [16, 16], strides = [1, 1]} : vector<16x96xf32> to vector<16x16xf32>
    %57 = arith.truncf %56 : vector<16x16xf32> to vector<16x16xbf16>
    %cst_22 = arith.constant dense<0.000000e+00> : vector<16x16xf32>
    %58 = tpu.matmul %53, %55, %cst_22 {dimension_numbers = #tpu.dot_dimension_numbers<[1], [1], [0], [0], [0, 0, 1, 0], [], []>} : vector<16x16xbf16>, vector<16x16xbf16>, vector<16x16xf32> -> vector<16x16xf32>
    %59 = arith.addf %58, %23 : vector<16x16xf32>
    %cst_23 = arith.constant dense<0xFF800000> : vector<16xf32>
    %60 = vector.multi_reduction <maximumf>, %59, %cst_23 [1] : vector<16x16xf32> to vector<16xf32>
    %61 = vector.shape_cast %60 : vector<16xf32> to vector<16x1xf32>
    %62 = vector.broadcast %61 : vector<16x1xf32> to vector<16x16xf32>
    %63 = arith.subf %59, %62 : vector<16x16xf32>
    %64 = math.exp %63 : vector<16x16xf32>
    %cst_24 = arith.constant dense<0.000000e+00> : vector<16xf32>
    %65 = vector.multi_reduction <add>, %64, %cst_24 [1] : vector<16x16xf32> to vector<16xf32>
    %66 = vector.shape_cast %65 : vector<16xf32> to vector<16x1xf32>
    %67 = tpu.reciprocal %66 {approx = true} : vector<16x1xf32> -> vector<16x1xf32>
    %68 = vector.broadcast %67 : vector<16x1xf32> to vector<16x16xf32>
    %69 = arith.mulf %64, %68 : vector<16x16xf32>
    %70 = arith.truncf %69 : vector<16x16xf32> to vector<16x16xbf16>
    %cst_25 = arith.constant dense<0.000000e+00> : vector<16x16xf32>
    %71 = tpu.matmul %70, %57, %cst_25 {dimension_numbers = #tpu.dot_dimension_numbers<[1], [0], [0], [1], [0, 0, 1, 1], [], []>} : vector<16x16xbf16>, vector<16x16xbf16>, vector<16x16xf32> -> vector<16x16xf32>
    %72 = tpu.concatenate %51, %71 in 1 : vector<16x16xf32>, vector<16x16xf32> -> vector<16x32xf32>
    %73 = arith.truncf %72 : vector<16x32xf32> to vector<16x32xbf16>
    %c0_26 = arith.constant 0 : index
    %c0_27 = arith.constant 0 : index
    %c0_28 = arith.constant 0 : index
    %74 = vector.load %arg6[%c0_26, %c0_27, %c0_28] : memref<2x32x32xbf16, #tpu.memory_space<vmem>>, vector<1x32x32xbf16>
    %75 = vector.shape_cast %74 : vector<1x32x32xbf16> to vector<32x32xbf16>
    %cst_29 = arith.constant dense<0.000000e+00> : vector<16x32xf32>
    %76 = tpu.matmul %73, %75, %cst_29 {dimension_numbers = #tpu.dot_dimension_numbers<[1], [0], [0], [1], [0, 0, 1, 1], [], []>} : vector<16x32xbf16>, vector<32x32xbf16>, vector<16x32xf32> -> vector<16x32xf32>
    %c0_30 = arith.constant 0 : index
    %c0_31 = arith.constant 0 : index
    %c0_32 = arith.constant 0 : index
    %77 = vector.load %arg7[%c0_30, %c0_31, %c0_32] : memref<2x1x32xf32, #tpu.memory_space<vmem>>, vector<1x1x32xf32>
    %78 = vector.shape_cast %77 : vector<1x1x32xf32> to vector<1x32xf32>
    %79 = vector.broadcast %78 : vector<1x32xf32> to vector<16x32xf32>
    %80 = arith.addf %76, %79 : vector<16x32xf32>
    %81 = arith.addf %80, %22 : vector<16x32xf32>
    %c0_33 = arith.constant 0 : index
    %c0_34 = arith.constant 0 : index
    %c0_35 = arith.constant 0 : index
    %82 = vector.load %arg8[%c0_33, %c0_34, %c0_35] : memref<2x1x32xf32, #tpu.memory_space<vmem>>, vector<1x1x32xf32>
    %83 = vector.shape_cast %82 : vector<1x1x32xf32> to vector<1x32xf32>
    %c0_36 = arith.constant 0 : index
    %c0_37 = arith.constant 0 : index
    %c0_38 = arith.constant 0 : index
    %84 = vector.load %arg9[%c0_36, %c0_37, %c0_38] : memref<2x1x32xf32, #tpu.memory_space<vmem>>, vector<1x1x32xf32>
    %85 = vector.shape_cast %84 : vector<1x1x32xf32> to vector<1x32xf32>
    %cst_39 = arith.constant dense<0.000000e+00> : vector<16xf32>
    %86 = vector.multi_reduction <add>, %81, %cst_39 [1] : vector<16x32xf32> to vector<16xf32>
    %87 = vector.shape_cast %86 : vector<16xf32> to vector<16x1xf32>
    %cst_40 = arith.constant 3.200000e+01 : f32
    %88 = vector.broadcast %cst_40 : f32 to vector<16x1xf32>
    %89 = arith.divf %87, %88 : vector<16x1xf32>
    %90 = vector.broadcast %89 : vector<16x1xf32> to vector<16x32xf32>
    %91 = arith.subf %81, %90 : vector<16x32xf32>
    %92 = arith.mulf %91, %91 : vector<16x32xf32>
    %cst_41 = arith.constant dense<0.000000e+00> : vector<16xf32>
    %93 = vector.multi_reduction <add>, %92, %cst_41 [1] : vector<16x32xf32> to vector<16xf32>
    %94 = vector.shape_cast %93 : vector<16xf32> to vector<16x1xf32>
    %cst_42 = arith.constant 3.200000e+01 : f32
    %95 = vector.broadcast %cst_42 : f32 to vector<16x1xf32>
    %96 = arith.divf %94, %95 : vector<16x1xf32>
    %cst_43 = arith.constant 9.99999996E-13 : f32
    %97 = vector.broadcast %cst_43 : f32 to vector<16x1xf32>
    %98 = arith.addf %96, %97 : vector<16x1xf32>
    %99 = math.rsqrt %98 : vector<16x1xf32>
    %100 = vector.broadcast %99 : vector<16x1xf32> to vector<16x32xf32>
    %101 = arith.mulf %91, %100 : vector<16x32xf32>
    %102 = vector.broadcast %83 : vector<1x32xf32> to vector<16x32xf32>
    %103 = arith.mulf %101, %102 : vector<16x32xf32>
    %104 = vector.broadcast %85 : vector<1x32xf32> to vector<16x32xf32>
    %105 = arith.addf %103, %104 : vector<16x32xf32>
    %106 = arith.truncf %105 : vector<16x32xf32> to vector<16x32xbf16>
    %c0_44 = arith.constant 0 : index
    %c0_45 = arith.constant 0 : index
    %c0_46 = arith.constant 0 : index
    %107 = vector.load %arg10[%c0_44, %c0_45, %c0_46] : memref<2x32x64xbf16, #tpu.memory_space<vmem>>, vector<1x32x64xbf16>
    %108 = vector.shape_cast %107 : vector<1x32x64xbf16> to vector<32x64xbf16>
    %cst_47 = arith.constant dense<0.000000e+00> : vector<16x64xf32>
    %109 = tpu.matmul %106, %108, %cst_47 {dimension_numbers = #tpu.dot_dimension_numbers<[1], [0], [0], [1], [0, 0, 1, 1], [], []>} : vector<16x32xbf16>, vector<32x64xbf16>, vector<16x64xf32> -> vector<16x64xf32>
    %c0_48 = arith.constant 0 : index
    %c0_49 = arith.constant 0 : index
    %c0_50 = arith.constant 0 : index
    %110 = vector.load %arg11[%c0_48, %c0_49, %c0_50] : memref<2x1x64xf32, #tpu.memory_space<vmem>>, vector<1x1x64xf32>
    %111 = vector.shape_cast %110 : vector<1x1x64xf32> to vector<1x64xf32>
    %112 = vector.broadcast %111 : vector<1x64xf32> to vector<16x64xf32>
    %113 = arith.addf %109, %112 : vector<16x64xf32>
    %cst_51 = arith.constant 5.000000e-01 : f32
    %114 = vector.broadcast %cst_51 : f32 to vector<16x64xf32>
    %115 = arith.mulf %114, %113 : vector<16x64xf32>
    %cst_52 = arith.constant 4.471500e-02 : f32
    %116 = vector.broadcast %cst_52 : f32 to vector<16x64xf32>
    %117 = arith.mulf %116, %113 : vector<16x64xf32>
    %118 = arith.mulf %117, %113 : vector<16x64xf32>
    %119 = arith.mulf %118, %113 : vector<16x64xf32>
    %120 = arith.addf %113, %119 : vector<16x64xf32>
    %cst_53 = arith.constant 0.797884583 : f32
    %121 = vector.broadcast %cst_53 : f32 to vector<16x64xf32>
    %122 = arith.mulf %121, %120 : vector<16x64xf32>
    %123 = math.tanh %122 : vector<16x64xf32>
    %cst_54 = arith.constant 1.000000e+00 : f32
    %124 = vector.broadcast %cst_54 : f32 to vector<16x64xf32>
    %125 = arith.addf %124, %123 : vector<16x64xf32>
    %126 = arith.mulf %115, %125 : vector<16x64xf32>
    %127 = arith.truncf %126 : vector<16x64xf32> to vector<16x64xbf16>
    %c0_55 = arith.constant 0 : index
    %c0_56 = arith.constant 0 : index
    %c0_57 = arith.constant 0 : index
    %128 = vector.load %arg12[%c0_55, %c0_56, %c0_57] : memref<2x64x32xbf16, #tpu.memory_space<vmem>>, vector<1x64x32xbf16>
    %129 = vector.shape_cast %128 : vector<1x64x32xbf16> to vector<64x32xbf16>
    %cst_58 = arith.constant dense<0.000000e+00> : vector<16x32xf32>
    %130 = tpu.matmul %127, %129, %cst_58 {dimension_numbers = #tpu.dot_dimension_numbers<[1], [0], [0], [1], [0, 0, 1, 1], [], []>} : vector<16x64xbf16>, vector<64x32xbf16>, vector<16x32xf32> -> vector<16x32xf32>
    %c0_59 = arith.constant 0 : index
    %c0_60 = arith.constant 0 : index
    %c0_61 = arith.constant 0 : index
    %131 = vector.load %arg13[%c0_59, %c0_60, %c0_61] : memref<2x1x32xf32, #tpu.memory_space<vmem>>, vector<1x1x32xf32>
    %132 = vector.shape_cast %131 : vector<1x1x32xf32> to vector<1x32xf32>
    %133 = vector.broadcast %132 : vector<1x32xf32> to vector<16x32xf32>
    %134 = arith.addf %130, %133 : vector<16x32xf32>
    %135 = arith.addf %134, %105 : vector<16x32xf32>
    %c0_62 = arith.constant 0 : index
    %c0_63 = arith.constant 0 : index
    %c0_64 = arith.constant 0 : index
    %136 = vector.load %arg14[%c0_62, %c0_63, %c0_64] : memref<2x1x32xf32, #tpu.memory_space<vmem>>, vector<1x1x32xf32>
    %137 = vector.shape_cast %136 : vector<1x1x32xf32> to vector<1x32xf32>
    %c0_65 = arith.constant 0 : index
    %c0_66 = arith.constant 0 : index
    %c0_67 = arith.constant 0 : index
    %138 = vector.load %arg15[%c0_65, %c0_66, %c0_67] : memref<2x1x32xf32, #tpu.memory_space<vmem>>, vector<1x1x32xf32>
    %139 = vector.shape_cast %138 : vector<1x1x32xf32> to vector<1x32xf32>
    %cst_68 = arith.constant dense<0.000000e+00> : vector<16xf32>
    %140 = vector.multi_reduction <add>, %135, %cst_68 [1] : vector<16x32xf32> to vector<16xf32>
    %141 = vector.shape_cast %140 : vector<16xf32> to vector<16x1xf32>
    %cst_69 = arith.constant 3.200000e+01 : f32
    %142 = vector.broadcast %cst_69 : f32 to vector<16x1xf32>
    %143 = arith.divf %141, %142 : vector<16x1xf32>
    %144 = vector.broadcast %143 : vector<16x1xf32> to vector<16x32xf32>
    %145 = arith.subf %135, %144 : vector<16x32xf32>
    %146 = arith.mulf %145, %145 : vector<16x32xf32>
    %cst_70 = arith.constant dense<0.000000e+00> : vector<16xf32>
    %147 = vector.multi_reduction <add>, %146, %cst_70 [1] : vector<16x32xf32> to vector<16xf32>
    %148 = vector.shape_cast %147 : vector<16xf32> to vector<16x1xf32>
    %cst_71 = arith.constant 3.200000e+01 : f32
    %149 = vector.broadcast %cst_71 : f32 to vector<16x1xf32>
    %150 = arith.divf %148, %149 : vector<16x1xf32>
    %cst_72 = arith.constant 9.99999996E-13 : f32
    %151 = vector.broadcast %cst_72 : f32 to vector<16x1xf32>
    %152 = arith.addf %150, %151 : vector<16x1xf32>
    %153 = math.rsqrt %152 : vector<16x1xf32>
    %154 = vector.broadcast %153 : vector<16x1xf32> to vector<16x32xf32>
    %155 = arith.mulf %145, %154 : vector<16x32xf32>
    %156 = vector.broadcast %137 : vector<1x32xf32> to vector<16x32xf32>
    %157 = arith.mulf %155, %156 : vector<16x32xf32>
    %158 = vector.broadcast %139 : vector<1x32xf32> to vector<16x32xf32>
    %159 = arith.addf %157, %158 : vector<16x32xf32>
    %160 = arith.truncf %159 : vector<16x32xf32> to vector<16x32xbf16>
    %c1 = arith.constant 1 : index
    %c0_73 = arith.constant 0 : index
    %c0_74 = arith.constant 0 : index
    %161 = vector.load %arg4[%c1, %c0_73, %c0_74] : memref<2x32x96xbf16, #tpu.memory_space<vmem>>, vector<1x32x96xbf16>
    %162 = vector.shape_cast %161 : vector<1x32x96xbf16> to vector<32x96xbf16>
    %cst_75 = arith.constant dense<0.000000e+00> : vector<16x96xf32>
    %163 = tpu.matmul %160, %162, %cst_75 {dimension_numbers = #tpu.dot_dimension_numbers<[1], [0], [0], [1], [0, 0, 1, 1], [], []>} : vector<16x32xbf16>, vector<32x96xbf16>, vector<16x96xf32> -> vector<16x96xf32>
    %c1_76 = arith.constant 1 : index
    %c0_77 = arith.constant 0 : index
    %c0_78 = arith.constant 0 : index
    %164 = vector.load %arg5[%c1_76, %c0_77, %c0_78] : memref<2x1x96xf32, #tpu.memory_space<vmem>>, vector<1x1x96xf32>
    %165 = vector.shape_cast %164 : vector<1x1x96xf32> to vector<1x96xf32>
    %166 = vector.broadcast %165 : vector<1x96xf32> to vector<16x96xf32>
    %167 = arith.addf %163, %166 : vector<16x96xf32>
    %168 = vector.extract_strided_slice %167 {offsets = [0, 0], sizes = [16, 16], strides = [1, 1]} : vector<16x96xf32> to vector<16x16xf32>
    %169 = arith.truncf %168 : vector<16x16xf32> to vector<16x16xbf16>
    %170 = vector.extract_strided_slice %167 {offsets = [0, 32], sizes = [16, 16], strides = [1, 1]} : vector<16x96xf32> to vector<16x16xf32>
    %171 = arith.truncf %170 : vector<16x16xf32> to vector<16x16xbf16>
    %172 = vector.extract_strided_slice %167 {offsets = [0, 64], sizes = [16, 16], strides = [1, 1]} : vector<16x96xf32> to vector<16x16xf32>
    %173 = arith.truncf %172 : vector<16x16xf32> to vector<16x16xbf16>
    %cst_79 = arith.constant dense<0.000000e+00> : vector<16x16xf32>
    %174 = tpu.matmul %169, %171, %cst_79 {dimension_numbers = #tpu.dot_dimension_numbers<[1], [1], [0], [0], [0, 0, 1, 0], [], []>} : vector<16x16xbf16>, vector<16x16xbf16>, vector<16x16xf32> -> vector<16x16xf32>
    %175 = arith.addf %174, %23 : vector<16x16xf32>
    %cst_80 = arith.constant dense<0xFF800000> : vector<16xf32>
    %176 = vector.multi_reduction <maximumf>, %175, %cst_80 [1] : vector<16x16xf32> to vector<16xf32>
    %177 = vector.shape_cast %176 : vector<16xf32> to vector<16x1xf32>
    %178 = vector.broadcast %177 : vector<16x1xf32> to vector<16x16xf32>
    %179 = arith.subf %175, %178 : vector<16x16xf32>
    %180 = math.exp %179 : vector<16x16xf32>
    %cst_81 = arith.constant dense<0.000000e+00> : vector<16xf32>
    %181 = vector.multi_reduction <add>, %180, %cst_81 [1] : vector<16x16xf32> to vector<16xf32>
    %182 = vector.shape_cast %181 : vector<16xf32> to vector<16x1xf32>
    %183 = tpu.reciprocal %182 {approx = true} : vector<16x1xf32> -> vector<16x1xf32>
    %184 = vector.broadcast %183 : vector<16x1xf32> to vector<16x16xf32>
    %185 = arith.mulf %180, %184 : vector<16x16xf32>
    %186 = arith.truncf %185 : vector<16x16xf32> to vector<16x16xbf16>
    %cst_82 = arith.constant dense<0.000000e+00> : vector<16x16xf32>
    %187 = tpu.matmul %186, %173, %cst_82 {dimension_numbers = #tpu.dot_dimension_numbers<[1], [0], [0], [1], [0, 0, 1, 1], [], []>} : vector<16x16xbf16>, vector<16x16xbf16>, vector<16x16xf32> -> vector<16x16xf32>
    %188 = vector.extract_strided_slice %167 {offsets = [0, 16], sizes = [16, 16], strides = [1, 1]} : vector<16x96xf32> to vector<16x16xf32>
    %189 = arith.truncf %188 : vector<16x16xf32> to vector<16x16xbf16>
    %190 = vector.extract_strided_slice %167 {offsets = [0, 48], sizes = [16, 16], strides = [1, 1]} : vector<16x96xf32> to vector<16x16xf32>
    %191 = arith.truncf %190 : vector<16x16xf32> to vector<16x16xbf16>
    %192 = vector.extract_strided_slice %167 {offsets = [0, 80], sizes = [16, 16], strides = [1, 1]} : vector<16x96xf32> to vector<16x16xf32>
    %193 = arith.truncf %192 : vector<16x16xf32> to vector<16x16xbf16>
    %cst_83 = arith.constant dense<0.000000e+00> : vector<16x16xf32>
    %194 = tpu.matmul %189, %191, %cst_83 {dimension_numbers = #tpu.dot_dimension_numbers<[1], [1], [0], [0], [0, 0, 1, 0], [], []>} : vector<16x16xbf16>, vector<16x16xbf16>, vector<16x16xf32> -> vector<16x16xf32>
    %195 = arith.addf %194, %23 : vector<16x16xf32>
    %cst_84 = arith.constant dense<0xFF800000> : vector<16xf32>
    %196 = vector.multi_reduction <maximumf>, %195, %cst_84 [1] : vector<16x16xf32> to vector<16xf32>
    %197 = vector.shape_cast %196 : vector<16xf32> to vector<16x1xf32>
    %198 = vector.broadcast %197 : vector<16x1xf32> to vector<16x16xf32>
    %199 = arith.subf %195, %198 : vector<16x16xf32>
    %200 = math.exp %199 : vector<16x16xf32>
    %cst_85 = arith.constant dense<0.000000e+00> : vector<16xf32>
    %201 = vector.multi_reduction <add>, %200, %cst_85 [1] : vector<16x16xf32> to vector<16xf32>
    %202 = vector.shape_cast %201 : vector<16xf32> to vector<16x1xf32>
    %203 = tpu.reciprocal %202 {approx = true} : vector<16x1xf32> -> vector<16x1xf32>
    %204 = vector.broadcast %203 : vector<16x1xf32> to vector<16x16xf32>
    %205 = arith.mulf %200, %204 : vector<16x16xf32>
    %206 = arith.truncf %205 : vector<16x16xf32> to vector<16x16xbf16>
    %cst_86 = arith.constant dense<0.000000e+00> : vector<16x16xf32>
    %207 = tpu.matmul %206, %193, %cst_86 {dimension_numbers = #tpu.dot_dimension_numbers<[1], [0], [0], [1], [0, 0, 1, 1], [], []>} : vector<16x16xbf16>, vector<16x16xbf16>, vector<16x16xf32> -> vector<16x16xf32>
    %208 = tpu.concatenate %187, %207 in 1 : vector<16x16xf32>, vector<16x16xf32> -> vector<16x32xf32>
    %209 = arith.truncf %208 : vector<16x32xf32> to vector<16x32xbf16>
    %c1_87 = arith.constant 1 : index
    %c0_88 = arith.constant 0 : index
    %c0_89 = arith.constant 0 : index
    %210 = vector.load %arg6[%c1_87, %c0_88, %c0_89] : memref<2x32x32xbf16, #tpu.memory_space<vmem>>, vector<1x32x32xbf16>
    %211 = vector.shape_cast %210 : vector<1x32x32xbf16> to vector<32x32xbf16>
    %cst_90 = arith.constant dense<0.000000e+00> : vector<16x32xf32>
    %212 = tpu.matmul %209, %211, %cst_90 {dimension_numbers = #tpu.dot_dimension_numbers<[1], [0], [0], [1], [0, 0, 1, 1], [], []>} : vector<16x32xbf16>, vector<32x32xbf16>, vector<16x32xf32> -> vector<16x32xf32>
    %c1_91 = arith.constant 1 : index
    %c0_92 = arith.constant 0 : index
    %c0_93 = arith.constant 0 : index
    %213 = vector.load %arg7[%c1_91, %c0_92, %c0_93] : memref<2x1x32xf32, #tpu.memory_space<vmem>>, vector<1x1x32xf32>
    %214 = vector.shape_cast %213 : vector<1x1x32xf32> to vector<1x32xf32>
    %215 = vector.broadcast %214 : vector<1x32xf32> to vector<16x32xf32>
    %216 = arith.addf %212, %215 : vector<16x32xf32>
    %217 = arith.addf %216, %159 : vector<16x32xf32>
    %c1_94 = arith.constant 1 : index
    %c0_95 = arith.constant 0 : index
    %c0_96 = arith.constant 0 : index
    %218 = vector.load %arg8[%c1_94, %c0_95, %c0_96] : memref<2x1x32xf32, #tpu.memory_space<vmem>>, vector<1x1x32xf32>
    %219 = vector.shape_cast %218 : vector<1x1x32xf32> to vector<1x32xf32>
    %c1_97 = arith.constant 1 : index
    %c0_98 = arith.constant 0 : index
    %c0_99 = arith.constant 0 : index
    %220 = vector.load %arg9[%c1_97, %c0_98, %c0_99] : memref<2x1x32xf32, #tpu.memory_space<vmem>>, vector<1x1x32xf32>
    %221 = vector.shape_cast %220 : vector<1x1x32xf32> to vector<1x32xf32>
    %cst_100 = arith.constant dense<0.000000e+00> : vector<16xf32>
    %222 = vector.multi_reduction <add>, %217, %cst_100 [1] : vector<16x32xf32> to vector<16xf32>
    %223 = vector.shape_cast %222 : vector<16xf32> to vector<16x1xf32>
    %cst_101 = arith.constant 3.200000e+01 : f32
    %224 = vector.broadcast %cst_101 : f32 to vector<16x1xf32>
    %225 = arith.divf %223, %224 : vector<16x1xf32>
    %226 = vector.broadcast %225 : vector<16x1xf32> to vector<16x32xf32>
    %227 = arith.subf %217, %226 : vector<16x32xf32>
    %228 = arith.mulf %227, %227 : vector<16x32xf32>
    %cst_102 = arith.constant dense<0.000000e+00> : vector<16xf32>
    %229 = vector.multi_reduction <add>, %228, %cst_102 [1] : vector<16x32xf32> to vector<16xf32>
    %230 = vector.shape_cast %229 : vector<16xf32> to vector<16x1xf32>
    %cst_103 = arith.constant 3.200000e+01 : f32
    %231 = vector.broadcast %cst_103 : f32 to vector<16x1xf32>
    %232 = arith.divf %230, %231 : vector<16x1xf32>
    %cst_104 = arith.constant 9.99999996E-13 : f32
    %233 = vector.broadcast %cst_104 : f32 to vector<16x1xf32>
    %234 = arith.addf %232, %233 : vector<16x1xf32>
    %235 = math.rsqrt %234 : vector<16x1xf32>
    %236 = vector.broadcast %235 : vector<16x1xf32> to vector<16x32xf32>
    %237 = arith.mulf %227, %236 : vector<16x32xf32>
    %238 = vector.broadcast %219 : vector<1x32xf32> to vector<16x32xf32>
    %239 = arith.mulf %237, %238 : vector<16x32xf32>
    %240 = vector.broadcast %221 : vector<1x32xf32> to vector<16x32xf32>
    %241 = arith.addf %239, %240 : vector<16x32xf32>
    %242 = arith.truncf %241 : vector<16x32xf32> to vector<16x32xbf16>
    %c1_105 = arith.constant 1 : index
    %c0_106 = arith.constant 0 : index
    %c0_107 = arith.constant 0 : index
    %243 = vector.load %arg10[%c1_105, %c0_106, %c0_107] : memref<2x32x64xbf16, #tpu.memory_space<vmem>>, vector<1x32x64xbf16>
    %244 = vector.shape_cast %243 : vector<1x32x64xbf16> to vector<32x64xbf16>
    %cst_108 = arith.constant dense<0.000000e+00> : vector<16x64xf32>
    %245 = tpu.matmul %242, %244, %cst_108 {dimension_numbers = #tpu.dot_dimension_numbers<[1], [0], [0], [1], [0, 0, 1, 1], [], []>} : vector<16x32xbf16>, vector<32x64xbf16>, vector<16x64xf32> -> vector<16x64xf32>
    %c1_109 = arith.constant 1 : index
    %c0_110 = arith.constant 0 : index
    %c0_111 = arith.constant 0 : index
    %246 = vector.load %arg11[%c1_109, %c0_110, %c0_111] : memref<2x1x64xf32, #tpu.memory_space<vmem>>, vector<1x1x64xf32>
    %247 = vector.shape_cast %246 : vector<1x1x64xf32> to vector<1x64xf32>
    %248 = vector.broadcast %247 : vector<1x64xf32> to vector<16x64xf32>
    %249 = arith.addf %245, %248 : vector<16x64xf32>
    %cst_112 = arith.constant 5.000000e-01 : f32
    %250 = vector.broadcast %cst_112 : f32 to vector<16x64xf32>
    %251 = arith.mulf %250, %249 : vector<16x64xf32>
    %cst_113 = arith.constant 4.471500e-02 : f32
    %252 = vector.broadcast %cst_113 : f32 to vector<16x64xf32>
    %253 = arith.mulf %252, %249 : vector<16x64xf32>
    %254 = arith.mulf %253, %249 : vector<16x64xf32>
    %255 = arith.mulf %254, %249 : vector<16x64xf32>
    %256 = arith.addf %249, %255 : vector<16x64xf32>
    %cst_114 = arith.constant 0.797884583 : f32
    %257 = vector.broadcast %cst_114 : f32 to vector<16x64xf32>
    %258 = arith.mulf %257, %256 : vector<16x64xf32>
    %259 = math.tanh %258 : vector<16x64xf32>
    %cst_115 = arith.constant 1.000000e+00 : f32
    %260 = vector.broadcast %cst_115 : f32 to vector<16x64xf32>
    %261 = arith.addf %260, %259 : vector<16x64xf32>
    %262 = arith.mulf %251, %261 : vector<16x64xf32>
    %263 = arith.truncf %262 : vector<16x64xf32> to vector<16x64xbf16>
    %c1_116 = arith.constant 1 : index
    %c0_117 = arith.constant 0 : index
    %c0_118 = arith.constant 0 : index
    %264 = vector.load %arg12[%c1_116, %c0_117, %c0_118] : memref<2x64x32xbf16, #tpu.memory_space<vmem>>, vector<1x64x32xbf16>
    %265 = vector.shape_cast %264 : vector<1x64x32xbf16> to vector<64x32xbf16>
    %cst_119 = arith.constant dense<0.000000e+00> : vector<16x32xf32>
    %266 = tpu.matmul %263, %265, %cst_119 {dimension_numbers = #tpu.dot_dimension_numbers<[1], [0], [0], [1], [0, 0, 1, 1], [], []>} : vector<16x64xbf16>, vector<64x32xbf16>, vector<16x32xf32> -> vector<16x32xf32>
    %c1_120 = arith.constant 1 : index
    %c0_121 = arith.constant 0 : index
    %c0_122 = arith.constant 0 : index
    %267 = vector.load %arg13[%c1_120, %c0_121, %c0_122] : memref<2x1x32xf32, #tpu.memory_space<vmem>>, vector<1x1x32xf32>
    %268 = vector.shape_cast %267 : vector<1x1x32xf32> to vector<1x32xf32>
    %269 = vector.broadcast %268 : vector<1x32xf32> to vector<16x32xf32>
    %270 = arith.addf %266, %269 : vector<16x32xf32>
    %271 = arith.addf %270, %241 : vector<16x32xf32>
    %c1_123 = arith.constant 1 : index
    %c0_124 = arith.constant 0 : index
    %c0_125 = arith.constant 0 : index
    %272 = vector.load %arg14[%c1_123, %c0_124, %c0_125] : memref<2x1x32xf32, #tpu.memory_space<vmem>>, vector<1x1x32xf32>
    %273 = vector.shape_cast %272 : vector<1x1x32xf32> to vector<1x32xf32>
    %c1_126 = arith.constant 1 : index
    %c0_127 = arith.constant 0 : index
    %c0_128 = arith.constant 0 : index
    %274 = vector.load %arg15[%c1_126, %c0_127, %c0_128] : memref<2x1x32xf32, #tpu.memory_space<vmem>>, vector<1x1x32xf32>
    %275 = vector.shape_cast %274 : vector<1x1x32xf32> to vector<1x32xf32>
    %cst_129 = arith.constant dense<0.000000e+00> : vector<16xf32>
    %276 = vector.multi_reduction <add>, %271, %cst_129 [1] : vector<16x32xf32> to vector<16xf32>
    %277 = vector.shape_cast %276 : vector<16xf32> to vector<16x1xf32>
    %cst_130 = arith.constant 3.200000e+01 : f32
    %278 = vector.broadcast %cst_130 : f32 to vector<16x1xf32>
    %279 = arith.divf %277, %278 : vector<16x1xf32>
    %280 = vector.broadcast %279 : vector<16x1xf32> to vector<16x32xf32>
    %281 = arith.subf %271, %280 : vector<16x32xf32>
    %282 = arith.mulf %281, %281 : vector<16x32xf32>
    %cst_131 = arith.constant dense<0.000000e+00> : vector<16xf32>
    %283 = vector.multi_reduction <add>, %282, %cst_131 [1] : vector<16x32xf32> to vector<16xf32>
    %284 = vector.shape_cast %283 : vector<16xf32> to vector<16x1xf32>
    %cst_132 = arith.constant 3.200000e+01 : f32
    %285 = vector.broadcast %cst_132 : f32 to vector<16x1xf32>
    %286 = arith.divf %284, %285 : vector<16x1xf32>
    %cst_133 = arith.constant 9.99999996E-13 : f32
    %287 = vector.broadcast %cst_133 : f32 to vector<16x1xf32>
    %288 = arith.addf %286, %287 : vector<16x1xf32>
    %289 = math.rsqrt %288 : vector<16x1xf32>
    %290 = vector.broadcast %289 : vector<16x1xf32> to vector<16x32xf32>
    %291 = arith.mulf %281, %290 : vector<16x32xf32>
    %292 = vector.broadcast %273 : vector<1x32xf32> to vector<16x32xf32>
    %293 = arith.mulf %291, %292 : vector<16x32xf32>
    %294 = vector.broadcast %275 : vector<1x32xf32> to vector<16x32xf32>
    %295 = arith.addf %293, %294 : vector<16x32xf32>
    %296 = vector.extract_strided_slice %295 {offsets = [0, 0], sizes = [1, 32], strides = [1, 1]} : vector<16x32xf32> to vector<1x32xf32>
    %297 = vector.extract_strided_slice %295 {offsets = [8, 0], sizes = [1, 32], strides = [1, 1]} : vector<16x32xf32> to vector<1x32xf32>
    %298 = tpu.concatenate %296, %297 in 0 : vector<1x32xf32>, vector<1x32xf32> -> vector<2x32xf32>
    %299 = arith.truncf %298 : vector<2x32xf32> to vector<2x32xbf16>
    %c0_134 = arith.constant 0 : index
    %c0_135 = arith.constant 0 : index
    %300 = vector.load %arg16[%c0_134, %c0_135] : memref<32x32xbf16, #tpu.memory_space<vmem>>, vector<32x32xbf16>
    %cst_136 = arith.constant dense<0.000000e+00> : vector<2x32xf32>
    %301 = tpu.matmul %299, %300, %cst_136 {dimension_numbers = #tpu.dot_dimension_numbers<[1], [0], [0], [1], [0, 0, 1, 1], [], []>} : vector<2x32xbf16>, vector<32x32xbf16>, vector<2x32xf32> -> vector<2x32xf32>
    %c0_137 = arith.constant 0 : index
    %c0_138 = arith.constant 0 : index
    %302 = vector.load %arg17[%c0_137, %c0_138] : memref<1x32xf32, #tpu.memory_space<vmem>>, vector<1x32xf32>
    %303 = vector.broadcast %302 : vector<1x32xf32> to vector<2x32xf32>
    %304 = arith.addf %301, %303 : vector<2x32xf32>
    %305 = math.tanh %304 : vector<2x32xf32>
    %306 = arith.truncf %305 : vector<2x32xf32> to vector<2x32xbf16>
    %c0_139 = arith.constant 0 : index
    %c0_140 = arith.constant 0 : index
    %307 = vector.load %arg18[%c0_139, %c0_140] : memref<32x512xbf16, #tpu.memory_space<vmem>>, vector<32x512xbf16>
    %cst_141 = arith.constant dense<0.000000e+00> : vector<2x512xf32>
    %308 = tpu.matmul %306, %307, %cst_141 {dimension_numbers = #tpu.dot_dimension_numbers<[1], [0], [0], [1], [0, 0, 1, 1], [], []>} : vector<2x32xbf16>, vector<32x512xbf16>, vector<2x512xf32> -> vector<2x512xf32>
    %c0_142 = arith.constant 0 : index
    %c0_143 = arith.constant 0 : index
    %309 = vector.load %arg19[%c0_142, %c0_143] : memref<1x512xf32, #tpu.memory_space<vmem>>, vector<1x512xf32>
    %310 = vector.broadcast %309 : vector<1x512xf32> to vector<2x512xf32>
    %311 = arith.addf %308, %310 : vector<2x512xf32>
    %cst_144 = arith.constant 0.000000e+00 : f32
    %312 = vector.broadcast %cst_144 : f32 to vector<2x512xf32>
    %313 = arith.maximumf %311, %312 : vector<2x512xf32>
    %314 = arith.truncf %313 : vector<2x512xf32> to vector<2x512xbf16>
    %c0_145 = arith.constant 0 : index
    %c0_146 = arith.constant 0 : index
    %315 = vector.load %arg20[%c0_145, %c0_146] : memref<512x128xbf16, #tpu.memory_space<vmem>>, vector<512x128xbf16>
    %cst_147 = arith.constant dense<0.000000e+00> : vector<2x128xf32>
    %316 = tpu.matmul %314, %315, %cst_147 {dimension_numbers = #tpu.dot_dimension_numbers<[1], [0], [0], [1], [0, 0, 1, 1], [], []>} : vector<2x512xbf16>, vector<512x128xbf16>, vector<2x128xf32> -> vector<2x128xf32>
    %c0_148 = arith.constant 0 : index
    %c0_149 = arith.constant 0 : index
    %317 = vector.load %arg21[%c0_148, %c0_149] : memref<1x128xf32, #tpu.memory_space<vmem>>, vector<1x128xf32>
    %318 = vector.broadcast %317 : vector<1x128xf32> to vector<2x128xf32>
    %319 = arith.addf %316, %318 : vector<2x128xf32>
    %cst_150 = arith.constant 0.000000e+00 : f32
    %320 = vector.broadcast %cst_150 : f32 to vector<2x128xf32>
    %321 = arith.maximumf %319, %320 : vector<2x128xf32>
    %322 = arith.truncf %321 : vector<2x128xf32> to vector<2x128xbf16>
    %c0_151 = arith.constant 0 : index
    %c0_152 = arith.constant 0 : index
    %323 = vector.load %arg22[%c0_151, %c0_152] : memref<128x128xbf16, #tpu.memory_space<vmem>>, vector<128x128xbf16>
    %cst_153 = arith.constant dense<0.000000e+00> : vector<2x128xf32>
    %324 = tpu.matmul %322, %323, %cst_153 {dimension_numbers = #tpu.dot_dimension_numbers<[1], [0], [0], [1], [0, 0, 1, 1], [], []>} : vector<2x128xbf16>, vector<128x128xbf16>, vector<2x128xf32> -> vector<2x128xf32>
    %c0_154 = arith.constant 0 : index
    %c0_155 = arith.constant 0 : index
    %325 = vector.load %arg23[%c0_154, %c0_155] : memref<1x128xf32, #tpu.memory_space<vmem>>, vector<1x128xf32>
    %326 = vector.broadcast %325 : vector<1x128xf32> to vector<2x128xf32>
    %327 = arith.addf %324, %326 : vector<2x128xf32>
    %c0_156 = arith.constant 0 : index
    %c0_157 = arith.constant 0 : index
    %328 = vector.load %arg24[%c0_156, %c0_157] : memref<2x128xf32, #tpu.memory_space<vmem>>, vector<2x128xf32>
    tpu.vector_store %arg24[%c0_156, %c0_157], %327 {strides = array<i32>} : memref<2x128xf32, #tpu.memory_space<vmem>>, vector<2x128xf32>,
    return
  }
}

</mosaic_0001>

<bundles_post_ra>
// kernel: tpu_custom_call.1
= control target key start
LH: loop header
LB: loop body
LE: loop exit
PB: predicated region body
PF: predicated region fallthrough
CT: control target
= control target key end

     0   :  { %s3337_s0 = inlined_call_operand.vmem [shape: f32[16,32], index: 0, kind: input, shape index: {}]   ;;  %s3338_s1 = inlined_call_operand.hbm [shape: f32[16,16], index: 1, kind: input, shape index: {}]   ;;  %s3339_s2 = inlined_call_operand.vmem [shape: f32[1,32], index: 2, kind: input, shape index: {}]   ;;  %s3340_s3 = inlined_call_operand.hbm [shape: f32[1,32], index: 3, kind: input, shape index: {}]   ;;  %s3341_s4 = inlined_call_operand.vmem [shape: bf16[2,32,96], index: 4, kind: input, shape index: {}]   ;;  %s3342_s5 = inlined_call_operand.hbm [shape: f32[2,1,96], index: 5, kind: input, shape index: {}]   ;;  %s3343_s6 = inlined_call_operand.hbm [shape: bf16[2,32,32], index: 6, kind: input, shape index: {}]   ;;  %s3344_s7 = inlined_call_operand.hbm [shape: f32[2,1,32], index: 7, kind: input, shape index: {}]   ;;  %s3345_s8 = inlined_call_operand.hbm [shape: f32[2,1,32], index: 8, kind: input, shape index: {}]   ;;  %s3346_s9 = inlined_call_operand.hbm [shape: f32[2,1,32], index: 9, kind: input, shape index: {}]   ;;  %s3347_s10 = inlined_call_operand.hbm [shape: bf16[2,32,64], index: 10, kind: input, shape index: {}]   ;;  %s3348_s11 = inlined_call_operand.hbm [shape: f32[2,1,64], index: 11, kind: input, shape index: {}]   ;;  %s3349_s12 = inlined_call_operand.vmem [shape: bf16[2,64,32], index: 12, kind: input, shape index: {}]   ;;  %s3350_s13 = inlined_call_operand.hbm [shape: f32[2,1,32], index: 13, kind: input, shape index: {}]   ;;  %s3351_s14 = inlined_call_operand.hbm [shape: f32[2,1,32], index: 14, kind: input, shape index: {}]   ;;  %s3352_s15 = inlined_call_operand.hbm [shape: f32[2,1,32], index: 15, kind: input, shape index: {}]   ;;  %s3353_s16 = inlined_call_operand.hbm [shape: bf16[32,32], index: 16, kind: input, shape index: {}]   ;;  %s3354_s17 = inlined_call_operand.hbm [shape: f32[1,32], index: 17, kind: input, shape index: {}]   ;;  %s3355_s18 = inlined_call_operand.vmem [shape: bf16[32,512], index: 18, kind: input, shape index: {}]   ;;  %s3356_s19 = inlined_call_operand.hbm [shape: f32[1,512], index: 19, kind: input, shape index: {}]   ;;  %s3357_s20 = inlined_call_operand.hbm [shape: bf16[512,128], index: 20, kind: input, shape index: {}]   ;;  %s3358_s21 = inlined_call_operand.vmem [shape: f32[1,128], index: 21, kind: input, shape index: {}]   ;;  %s3359_s22 = inlined_call_operand.hbm [shape: bf16[128,128], index: 22, kind: input, shape index: {}]   ;;  %s3360_s23 = inlined_call_operand.vmem [shape: f32[1,128], index: 23, kind: input, shape index: {}]   ;;  %s3361_s24 = inlined_call_operand.hbm [shape: f32[2,128], index: 24, kind: output, shape index: {}]  }
   0x1   :  { %3364 = sst [smem:[#allocation40_spill]] %s3337_s0 }
   0x2   :  { %3365 = sst [smem:[#allocation41_spill]] %s3338_s1 }
   0x3   :  { %3366 = sst [smem:[#allocation42_spill]] %s3339_s2 }
   0x4   :  { %3367 = sst [smem:[#allocation43_spill]] %s3340_s3 }
   0x5   :  { %3368 = sst [smem:[#allocation44_spill]] %s3341_s4 }
   0x6   :  { %3369 = sst [smem:[#allocation45_spill]] %s3342_s5 }
   0x7   :  { %3370 = sst [smem:[#allocation46_spill]] %s3343_s6 }
   0x8   :  { %3371 = sst [smem:[#allocation47_spill]] %s3344_s7 }
   0x9   :  { %3372 = sst [smem:[#allocation48_spill]] %s3345_s8 }
   0xa   :  { %3373 = sst [smem:[#allocation49_spill]] %s3361_s24 }
   0xb   :  { %29 = vsyncpa [#allocation3], 0 }
   0xc   :  { %30 = vsyncpa [#allocation6], 0 }
   0xd   :  { %31 = vsyncpa [#allocation9], 0 }
   0xe   :  { %32 = vsyncpa [#allocation12], 0 }
   0xf   :  { %33 = vsyncpa [#allocation15], 0 }
  0x10   :  { %34 = vsyncpa [#allocation18], 0 }
  0x11   :  { %35 = vsyncpa [#allocation21], 0 }
  0x12   :  { %36 = vsyncpa [#allocation24], 0 }
  0x13   :  { %37 = vsyncpa [#allocation27], 0  ;;  %s3374_s27 = sld [smem:[#allocation43_spill]] }
  0x19   :  { %s61_s28 = sshll.u32 %s3374_s27, 4  ;;  %s62_s28 = int_to_ptr.hbm [resolvable:$true] %s61_s28 }
  0x1a   :  { %38 = vsyncpa [#allocation4], 0  ;;  %s2856_s6 = smov [#allocation5]   ;;  %s3375_s7 = sld [smem:[#allocation46_spill]] }
  0x1b   :  { %s63_s2 = sshll.u32 %s2856_s6, 4  ;;  %s2857_s3 = smov [#allocation8]   ;;  %s64_s2 = int_to_ptr.vmem [resolvable:$true] %s63_s2 }
  0x1c   :  { %66 = dma.hbm_to_vmem [thread:$0]  %s62_s28, 16, %s64_s2, [#allocation6]  }
  0x1d   :  { %s88_s25 = sshll.u32 %s2857_s3, 4  ;;  %s2858_s8 = smov 64   ;;  %s89_s25 = int_to_ptr.vmem [resolvable:$true] %s88_s25 }
  0x1e   :  { %s2859_s4 = smov 4   ;;  %s3376_s26 = sld [smem:[#allocation48_spill]] }
  0x1f   :  { %s2860_s6 = smov [#allocation11]   ;;  %s138_s2 = sshll.u32 %s3347_s10, 4  ;;  %s139_s2 = int_to_ptr.hbm [resolvable:$true] %s138_s2 }
  0x20   :  { %s86_s30 = sshll.u32 %s3375_s7, 4  ;;  %s114_s24 = sshll.u32 %s2860_s6, 4  ;;  %s87_s30 = int_to_ptr.hbm [resolvable:$true] %s86_s30  ;;  %s115_s24 = int_to_ptr.vmem [resolvable:$true] %s114_s24 }
  0x21   :  { %94 = dma.hbm_to_vmem [thread:$0]  %s87_s30, 512, %s89_s25, [#allocation9], %s2858_s8, %s2858_s8, %s2859_s4  }
  0x22   :  { %s2861_s0 = smov 16   ;;  %s2862_s7 = smov 1  }
  0x23   :  { %s2863_s30 = smov [#allocation14]   ;;  %s166_s5 = sshll.u32 %s3350_s13, 4  ;;  %s167_s5 = int_to_ptr.hbm [resolvable:$true] %s166_s5 }
  0x24   :  { %s112_s27 = sshll.u32 %s3376_s26, 4  ;;  %s140_s3 = sshll.u32 %s2863_s30, 4  ;;  %s113_s27 = int_to_ptr.hbm [resolvable:$true] %s112_s27  ;;  %s141_s3 = int_to_ptr.vmem [resolvable:$true] %s140_s3 }
  0x25   :  { %120 = dma.hbm_to_vmem [thread:$0]  %s113_s27, 32, %s115_s24, [#allocation12], %s2861_s0, %s2861_s0, %s2862_s7  }
  0x26   :  { %146 = dma.hbm_to_vmem [thread:$0]  %s139_s2, 512, %s141_s3, [#allocation15], %s2858_s8, %s2858_s8, %s2859_s4  }
  0x27   :  { %s192_s6 = sshll.u32 %s3352_s15, 4  ;;  %s2864_s29 = smov [#allocation17]   ;;  %s193_s6 = int_to_ptr.hbm [resolvable:$true] %s192_s6 }
  0x28   :  { %s168_s28 = sshll.u32 %s2864_s29, 4  ;;  %s2865_s24 = smov [#allocation20]   ;;  %s169_s28 = int_to_ptr.vmem [resolvable:$true] %s168_s28 }
  0x29   :  { %174 = dma.hbm_to_vmem [thread:$0]  %s167_s5, 32, %s169_s28, [#allocation18], %s2861_s0, %s2861_s0, %s2862_s7  }
  0x2a   :  { %s194_s13 = sshll.u32 %s2865_s24, 4  ;;  %s219_s25 = sshll.u32 %s3354_s17, 4  ;;  %s195_s13 = int_to_ptr.vmem [resolvable:$true] %s194_s13  ;;  %s220_s25 = int_to_ptr.hbm [resolvable:$true] %s219_s25 }
  0x2b   :  { %200 = dma.hbm_to_vmem [thread:$0]  %s193_s6, 32, %s195_s13, [#allocation21], %s2861_s0, %s2861_s0, %s2862_s7  }
  0x2c   :  { %s242_s3 = sshll.u32 %s3357_s20, 4  ;;  %s2866_s1 = smov [#allocation23]   ;;  %s243_s3 = int_to_ptr.hbm [resolvable:$true] %s242_s3 }
  0x2d   :  { %s221_s10 = sshll.u32 %s2866_s1, 4  ;;  %s2867_s5 = smov [#allocation26]   ;;  %s222_s10 = int_to_ptr.vmem [resolvable:$true] %s221_s10 }
  0x2e   :  { %224 = dma.hbm_to_vmem [thread:$0]  %s220_s25, 16, %s222_s10, [#allocation24]  }
  0x2f   :  { %s244_s26 = sshll.u32 %s2867_s5, 4  ;;  %s3377_s17 = sld [smem:[#allocation41_spill]]  ;;  %s245_s26 = int_to_ptr.vmem [resolvable:$true] %s244_s26 }
  0x30   :  { %250 = dma.hbm_to_vmem [thread:$0]  %s243_s3, 4096, %s245_s26, [#allocation27], %s2858_s8, %s2858_s8, %s2859_s4  }
  0x31   :  { %s2868_s6 = smov [#allocation2]   ;;  %s3378_s30 = sld [smem:[#allocation45_spill]] }
  0x32   :  { %s47_s13 = sshll.u32 %s2868_s6, 4  ;;  %s2869_s25 = smov 128   ;;  %s48_s13 = int_to_ptr.vmem [resolvable:$true] %s47_s13 }
  0x33   :  { %s2870_s2 = smov 8   ;;  %s2871_s1 = smov [#allocation7]  }
  0x34   :  { %s75_s10 = sshll.u32 %s2871_s1, 4  ;;  %s3379_s28 = sld [smem:[#allocation47_spill]]  ;;  %s76_s10 = int_to_ptr.vmem [resolvable:$true] %s75_s10 }
  0x35   :  { %s45_s24 = sshll.u32 %s3377_s17, 4  ;;  %s125_s6 = sshll.u32 %s3346_s9, 4  ;;  %s46_s24 = int_to_ptr.hbm [resolvable:$true] %s45_s24  ;;  %s126_s6 = int_to_ptr.hbm [resolvable:$true] %s125_s6 }
  0x36   :  { %53 = dma.hbm_to_vmem [thread:$0]  %s46_s24, 256, %s48_s13, [#allocation3], %s2869_s25, %s2869_s25, %s2870_s2  }
  0x37   :  { %s73_s15 = sshll.u32 %s3378_s30, 4  ;;  %s2872_s20 = smov [#allocation10]   ;;  %s74_s15 = int_to_ptr.hbm [resolvable:$true] %s73_s15 }
  0x38   :  { %81 = dma.hbm_to_vmem [thread:$0]  %s74_s15, 32, %s76_s10, [#allocation6], %s2861_s0, %s2861_s0, %s2862_s7  }
  0x39   :  { %s101_s27 = sshll.u32 %s2872_s20, 4  ;;  %s2873_s24 = smov [#allocation13]   ;;  %s102_s27 = int_to_ptr.vmem [resolvable:$true] %s101_s27 }
  0x3a   :  { %s99_s17 = sshll.u32 %s3379_s28, 4  ;;  %s127_s13 = sshll.u32 %s2873_s24, 4  ;;  %s100_s17 = int_to_ptr.hbm [resolvable:$true] %s99_s17  ;;  %s128_s13 = int_to_ptr.vmem [resolvable:$true] %s127_s13 }
  0x3b   :  { %107 = dma.hbm_to_vmem [thread:$0]  %s100_s17, 32, %s102_s27, [#allocation9], %s2861_s0, %s2861_s0, %s2862_s7  }
  0x3c   :  { %s151_s2 = sshll.u32 %s3348_s11, 4  ;;  %s179_s1 = sshll.u32 %s3351_s14, 4  ;;  %s152_s2 = int_to_ptr.hbm [resolvable:$true] %s151_s2  ;;  %s180_s1 = int_to_ptr.hbm [resolvable:$true] %s179_s1 }
  0x3d   :  { %133 = dma.hbm_to_vmem [thread:$0]  %s126_s6, 32, %s128_s13, [#allocation12], %s2861_s0, %s2861_s0, %s2862_s7  }
  0x3e   :  { %s2874_s10 = smov [#allocation16]   ;;  %s2875_s29 = smov [#allocation19]  }
  0x3f   :  { %s153_s5 = sshll.u32 %s2874_s10, 4  ;;  %s181_s11 = sshll.u32 %s2875_s29, 4  ;;  %s154_s5 = int_to_ptr.vmem [resolvable:$true] %s153_s5  ;;  %s182_s11 = int_to_ptr.vmem [resolvable:$true] %s181_s11 }
  0x40   :  { %159 = dma.hbm_to_vmem [thread:$0]  %s152_s2, 32, %s154_s5, [#allocation15], %s2861_s0, %s2861_s0, %s2862_s7  }
  0x41   :  { %s205_s3 = sshll.u32 %s3353_s16, 4  ;;  %s232_s6 = sshll.u32 %s3356_s19, 4  ;;  %s206_s3 = int_to_ptr.hbm [resolvable:$true] %s205_s3  ;;  %s233_s6 = int_to_ptr.hbm [resolvable:$true] %s232_s6 }
  0x42   :  { %187 = dma.hbm_to_vmem [thread:$0]  %s180_s1, 32, %s182_s11, [#allocation18], %s2861_s0, %s2861_s0, %s2862_s7  }
  0x43   :  { %s2876_s20 = smov [#allocation22]   ;;  %s2877_s24 = smov [#allocation25]  }
  0x44   :  { %s207_s27 = sshll.u32 %s2876_s20, 4  ;;  %s234_s16 = sshll.u32 %s2877_s24, 4  ;;  %s208_s27 = int_to_ptr.vmem [resolvable:$true] %s207_s27  ;;  %s235_s16 = int_to_ptr.vmem [resolvable:$true] %s234_s16 }
  0x45   :  { %213 = dma.hbm_to_vmem [thread:$0]  %s206_s3, 256, %s208_s27, [#allocation21], %s2858_s8, %s2858_s8, %s2859_s4  }
  0x46   :  { %s257_s25 = sshll.u32 %s3359_s22, 4  ;;  %s2878_s7 = smov [#allocation28]   ;;  %s258_s25 = int_to_ptr.hbm [resolvable:$true] %s257_s25 }
  0x47   :  { %237 = dma.hbm_to_vmem [thread:$0]  %s233_s6, 64, %s235_s16, [#allocation24]  }
  0x48   :  { %s259_s2 = sshll.u32 %s2878_s7, 4  ;;  %s260_s2 = int_to_ptr.vmem [resolvable:$true] %s259_s2 }
  0x49   :  { %265 = dma.hbm_to_vmem [thread:$0]  %s258_s25, 1024, %s260_s2, [#allocation27], %s2858_s8, %s2858_s8, %s2859_s4  }
  0x4a   :  { %2836 = dma.done.wait [#allocation3], 256  }
  0x4b   :  { %2837 = vsyncadd [#allocation3], 4294967040 }
  0x4c   :  { %2838 = dma.done.wait [#allocation6], 48  }
  0x4d   :  { %2839 = vsyncadd [#allocation6], 4294967248 }
  0x4e   :  { %2840 = dma.done.wait [#allocation9], 544  }
  0x4f   :  { %2841 = vsyncadd [#allocation9], 4294966752 }
  0x50   :  { %2842 = dma.done.wait [#allocation12], 64  }
  0x51   :  { %2843 = vsyncadd [#allocation12], 4294967232 }
  0x52   :  { %2844 = dma.done.wait [#allocation15], 544  }
  0x53   :  { %2845 = vsyncadd [#allocation15], 4294966752 }
  0x54   :  { %2846 = dma.done.wait [#allocation18], 64  }
  0x55   :  { %2847 = vsyncadd [#allocation18], 4294967232 }
  0x56   :  { %2848 = dma.done.wait [#allocation21], 288  }
  0x57   :  { %2849 = vsyncadd [#allocation21], 4294967008 }
  0x58   :  { %2850 = dma.done.wait [#allocation24], 80  }
  0x59   :  { %2851 = vsyncadd [#allocation24], 4294967216 }
  0x5a   :  { %2852 = dma.done.wait [#allocation27], 5120  }
  0x5b   :  { %2853 = vsyncadd [#allocation27], 4294962176  ;;  %vm341_vm0 = vcmask 261120   ;;  %s3380_s4 = sld [smem:[#allocation40_spill]]  ;;  %v2879_v4 = vmov 32.0   ;;  %s2880_s14 = smov 112  }
  0x5c   :  { %2340 = vrcp.f32 %v2879_v4  ;;  %s3381_s5 = sld [smem:[#allocation44_spill]]  ;;  %v2320_v47 = vld [vmem:[#allocation5] ss:$0 sm:$0xff]  ;;  %v2321_v53 = vld [vmem:[#allocation7] ss:$0 sm:$0xff]  ;;  %s2881_s26 = smov 96  }
  0x5d   :  { %s3382_s3 = sld [smem:[#allocation42_spill]]  ;;  %s2882_s6 = smov 80   ;;  %vm447_vm8 = vcmask 130048   ;;  %v3145_v63 = vld [vmem:[#allocation2] sm:$0xff]  ;;  %vm777_vm15 = vcmask 523264  }
  0x5e   :  { %s2883_s20 = smov 48   ;;  %s3383_s16 = sld [smem:[#allocation49_spill]] }
  0x61   :  { %v337_v0 = vld [vmem:[%s3380_s4] sm:$0xff]  ;;  %v338_v1 = vld [vmem:[%s3380_s4 + $0x8] sm:$0xff] }
  0x62   :  { %v342_v2 = vsel %vm341_vm0, %v337_v0, 0.0  ;;  %v345_v3 = vsel %vm341_vm0, %v338_v1, 0.0  ;;  %v2341_v5 = vpop.eup %2340  ;;  %v2211_v21 = vld [vmem:[%s3381_s5 + $0x8] sm:$0xff]  ;;  %v2210_v23 = vld [vmem:[%s3381_s5] sm:$0xff] }
  0x63   :  { %343 = vadd.xlane.f32.xlu0 %v342_v2  ;;  %v349_v6 = vmul.f32 32.0, %v2341_v5  ;;  %vm353_vm1 = vweird.f32 %v2341_v5  ;;  %435 = vmatpush.bf16.msra.mxu1 %v2211_v21  ;;  %v2319_v42 = vld [vmem:[%s3382_s3] ss:$0 sm:$0xff] }
  0x64   :  { %s1879_s13 = sshll.u32 %s3383_s16, 4  ;;  %s1880_s13 = int_to_ptr.hbm [resolvable:$true] %s1879_s13 }
  0x65   :  { %v350_v7 = vsub.f32 1.0, %v349_v6 }
  0x67   :  { %v351_v8 = vmul.f32 %v2341_v5, %v350_v7  ;;  %436 = vmatpush.bf16.msra.mxu1 %v2210_v23 }
  0x69   :  { %v352_v9 = vadd.f32 %v2341_v5, %v351_v8 }
  0x6b   :  { %346 = vadd.xlane.f32.xlu0 %v345_v3  ;;  %v3108_v10 = vsel %vm353_vm1, %v2341_v5, %v352_v9  ;;  %v3149_v3 = vld [vmem:[#allocation2 + $0x8] sm:$0xff] }
  0xd6   :  { %v344_v11 = vpop.xlane.xlu0 %343 }
  0xd7   :  { %v355_v12 = vmul.f32 %v3108_v10, %v344_v11 }
  0xd9   :  { %v357_v13 = vsub.f32 %v337_v0, %v355_v12 }
  0xdb   :  { %v359_v14 = vmul.f32 %v357_v13, %v357_v13 }
  0xdd   :  { %v361_v15 = vsel %vm341_vm0, %v359_v14, 0.0 }
  0xde   :  { %362 = vadd.xlane.f32.xlu1 %v361_v15  ;;  %v347_v16 = vpop.xlane.xlu0 %346 }
  0xdf   :  { %v356_v17 = vmul.f32 %v3108_v10, %v347_v16 }
  0xe1   :  { %v358_v18 = vsub.f32 %v338_v1, %v356_v17 }
  0xe3   :  { %v360_v19 = vmul.f32 %v358_v18, %v358_v18 }
  0xe5   :  { %v364_v20 = vsel %vm341_vm0, %v360_v19, 0.0 }
  0xe6   :  { %365 = vadd.xlane.f32.xlu1 %v364_v20 }
 0x151   :  { %v363_v22 = vpop.xlane.xlu1 %362 }
 0x152   :  { %v367_v24 = vmul.f32 %v363_v22, %v3108_v10 }
 0x154   :  { %v369_v25 = vadd.f32 1e-12, %v367_v24 }
 0x156   :  { %2342 = vrsqrt.f32 %v369_v25  ;;  %vm377_vm3 = vweird.f32 %v369_v25 }
 0x159   :  { %v366_v26 = vpop.xlane.xlu1 %365 }
 0x15a   :  { %v368_v27 = vmul.f32 %v366_v26, %v3108_v10 }
 0x15c   :  { %v2343_v28 = vpop.eup %2342  ;;  %v370_v29 = vadd.f32 1e-12, %v368_v27 }
 0x15d   :  { %v372_v30 = vmul.f32 %v2343_v28, %v369_v25  ;;  %vm378_vm2 = vweird.f32 %v2343_v28 }
 0x15e   :  { %2344 = vrsqrt.f32 %v370_v29  ;;  %vm379_vm4 = vmor %vm377_vm3, %vm378_vm2  ;;  %vm387_vm6 = vweird.f32 %v370_v29 }
 0x15f   :  { %v373_v31 = vmul.f32 %v2343_v28, %v372_v30 }
 0x161   :  { %v374_v32 = vmul.f32 0.5, %v373_v31 }
 0x163   :  { %v375_v33 = vsub.f32 1.5, %v374_v32 }
 0x164   :  { %v2345_v34 = vpop.eup %2344 }
 0x165   :  { %v376_v35 = vmul.f32 %v2343_v28, %v375_v33  ;;  %v382_v36 = vmul.f32 %v2345_v34, %v370_v29  ;;  %vm388_vm5 = vweird.f32 %v2345_v34 }
 0x166   :  { %vm389_vm7 = vmor %vm387_vm6, %vm388_vm5 }
 0x167   :  { %v383_v37 = vmul.f32 %v2345_v34, %v382_v36  ;;  %v380_v38 = vsel %vm379_vm4, %v2343_v28, %v376_v35 }
 0x168   :  { %v391_v41 = vmul.f32 %v380_v38, %v357_v13 }
 0x169   :  { %v384_v39 = vmul.f32 0.5, %v383_v37 }
 0x16a   :  { %v396_v46 = vmul.f32 %v2319_v42, %v391_v41 }
 0x16b   :  { %v385_v40 = vsub.f32 1.5, %v384_v39 }
 0x16c   :  { %v3125_v49 = vadd.f32 %v2320_v47, %v396_v46 }
 0x16d   :  { %v386_v43 = vmul.f32 %v2345_v34, %v385_v40 }
 0x16f   :  { %v390_v44 = vsel %vm389_vm7, %v2345_v34, %v386_v43 }
 0x170   :  { %v392_v45 = vmul.f32 %v390_v44, %v358_v18 }
 0x172   :  { %v397_v48 = vmul.f32 %v2319_v42, %v392_v45 }
 0x174   :  { %v3127_v50 = vadd.f32 %v2320_v47, %v397_v48 }
 0x176   :  { %v405_v51 = vpack.c.bf16 %v3127_v50, %v3125_v49 }
 0x178   :  { %1905 = vmatmul.msk.bf16.vlgmr.msra.gmra.mxu1 %vm341_vm0, %v405_v51 }
 0x1f5   :  { %v438_v52 = vpop.f32.mrf.mxu1 }
 0x1f6   :  { %v439_v55 = vadd.f32 %v2321_v53, %v438_v52  ;;  %v2213_v52 = vld [vmem:[#allocation8 + $0x8] sm:$0xff] }
 0x1f7   :  { %618 = vmatpush.bf16.msra.mxu0 %v2213_v52 }
 0x1fd   :  { %v440_v54 = vpop.f32.mrf.mxu1 }
 0x1fe   :  { %v441_v56 = vadd.f32 %v2321_v53, %v440_v54 }
 0x200   :  { %v3132_v57 = vpack.c.bf16 %v441_v56, %v439_v55 }
 0x202   :  { %511 = vrot.lane.b32.xlu0 %v3132_v57, %s2880_s14  ;;  %445 = vrot.lane.b32.xlu2 %v3132_v57, %s2881_s26 }
 0x20a   :  { %513 = vrot.lane.b32.xlu2 %v3132_v57, %s2882_s6 }
 0x25c   :  { %v446_v58 = vpop.permute.xlu2 %445 }
 0x25d   :  { %v452_v59 = vsel %vm447_vm8, %v446_v58, 0  ;;  %v2212_v58 = vld [vmem:[#allocation8] sm:$0xff] }
 0x25e   :  { %461 = vmatpush.bf16.xpose.msrb.mxu1 %v452_v59  ;;  %619 = vmatpush.bf16.msra.mxu0 %v2212_v58  ;;  %v2325_v58 = vld [vmem:[#allocation16] ss:$0 sm:$0xff] }
 0x264   :  { %v514_v60 = vpop.permute.xlu2 %513 }
 0x265   :  { %1906 = vmatmul.msk.bf16.vlgmr.msrb.gmra.mxu1 %vm447_vm8, %v3132_v57  ;;  %v519_v61 = vsel %vm447_vm8, %v514_v60, 0 }
 0x266   :  { %528 = vmatpush.bf16.xpose.msra.mxu3 %v519_v61 }
 0x274   :  { %v512_v62 = vpop.permute.xlu0 %511 }
 0x275   :  { %1908 = vmatmul.msk.bf16.vlgmr.msra.gmra.mxu3 %vm447_vm8, %v512_v62 }
 0x2e2   :  { %v463_v0 = vpop.f32.mrf.mxu1 }
 0x2e3   :  { %v464_v1 = vadd.f32 %v463_v0, %v3145_v63 }
 0x2e5   :  { %v468_v2 = vsel %vm447_vm8, %v464_v1, -inf }
 0x2e6   :  { %469 = vmax.xlane.f32.xlu1 %v468_v2  ;;  %v2322_v2 = vld [vmem:[#allocation10] ss:$0 sm:$0xff] }
 0x2ea   :  { %v465_v4 = vpop.f32.mrf.mxu1 }
 0x2eb   :  { %v466_v5 = vadd.f32 %v465_v4, %v3149_v3 }
 0x2ed   :  { %v471_v6 = vsel %vm447_vm8, %v466_v5, -inf }
 0x2ee   :  { %472 = vmax.xlane.f32.xlu2 %v471_v6 }
 0x2f8   :  { %v530_v7 = vpop.f32.mrf.mxu3 }
 0x2f9   :  { %v531_v8 = vadd.f32 %v530_v7, %v3145_v63 }
 0x2fb   :  { %v535_v9 = vsel %vm447_vm8, %v531_v8, -inf }
 0x2fc   :  { %536 = vmax.xlane.f32.xlu1 %v535_v9 }
 0x300   :  { %v532_v11 = vpop.f32.mrf.mxu3 }
 0x301   :  { %v533_v12 = vadd.f32 %v532_v11, %v3149_v3 }
 0x303   :  { %v538_v13 = vsel %vm447_vm8, %v533_v12, -inf }
 0x304   :  { %539 = vmax.xlane.f32.xlu1 %v538_v13 }
 0x31d   :  { %491 = vrot.lane.b32.xlu1 %v3132_v57, %s2858_s8 }
 0x359   :  { %v470_v14 = vpop.xlane.xlu1 %469 }
 0x35a   :  { %v474_v15 = vsub.f32 %v464_v1, %v470_v14 }
 0x35c   :  { %v476_v16 = vmul.f32 1.442695, %v474_v15 }
 0x35e   :  { %2346 = vpow2.f32 %v476_v16 }
 0x361   :  { %v473_v17 = vpop.xlane.xlu2 %472 }
 0x362   :  { %v475_v18 = vsub.f32 %v466_v5, %v473_v17 }
 0x364   :  { %v2347_v19 = vpop.eup %2346  ;;  %v478_v20 = vmul.f32 1.442695, %v475_v18 }
 0x365   :  { %v480_v21 = vsel %vm447_vm8, %v2347_v19, 0.0 }
 0x366   :  { %2348 = vpow2.f32 %v478_v20  ;;  %481 = vadd.xlane.f32.xlu0 %v480_v21 }
 0x36c   :  { %v2349_v22 = vpop.eup %2348 }
 0x36d   :  { %v483_v23 = vsel %vm447_vm8, %v2349_v22, 0.0 }
 0x36e   :  { %484 = vadd.xlane.f32.xlu1 %v483_v23 }
 0x36f   :  { %v537_v24 = vpop.xlane.xlu1 %536 }
 0x370   :  { %v541_v25 = vsub.f32 %v531_v8, %v537_v24  ;;  %v2214_v24 = vld [vmem:[#allocation14] sm:$0xff] }
 0x372   :  { %v543_v26 = vmul.f32 1.442695, %v541_v25 }
 0x374   :  { %2350 = vpow2.f32 %v543_v26 }
 0x377   :  { %v540_v27 = vpop.xlane.xlu1 %539 }
 0x378   :  { %v542_v28 = vsub.f32 %v533_v12, %v540_v27 }
 0x37a   :  { %v2351_v29 = vpop.eup %2350  ;;  %v545_v30 = vmul.f32 1.442695, %v542_v28 }
 0x37b   :  { %v547_v31 = vsel %vm447_vm8, %v2351_v29, 0.0 }
 0x37c   :  { %2352 = vpow2.f32 %v545_v30  ;;  %548 = vadd.xlane.f32.xlu2 %v547_v31 }
 0x382   :  { %v2353_v32 = vpop.eup %2352 }
 0x383   :  { %v550_v33 = vsel %vm447_vm8, %v2353_v32, 0.0 }
 0x384   :  { %551 = vadd.xlane.f32.xlu2 %v550_v33 }
 0x387   :  { %558 = vrot.lane.b32.xlu1 %v3132_v57, %s2883_s20 }
 0x38f   :  { %v492_v34 = vpop.permute.xlu1 %491 }
 0x390   :  { %504 = vmatpush.bf16.msra.mxu2 %v492_v34 }
 0x3d9   :  { %v482_v35 = vpop.xlane.xlu0 %481 }
 0x3da   :  { %2354 = vrcp.f32 %v482_v35 }
 0x3e0   :  { %v2355_v37 = vpop.eup %2354 }
 0x3e1   :  { %v485_v36 = vpop.xlane.xlu1 %484  ;;  %v488_v39 = vmul.f32 %v2355_v37, %v2347_v19 }
 0x3e2   :  { %2356 = vrcp.f32 %v485_v36 }
 0x3e8   :  { %v2357_v38 = vpop.eup %2356 }
 0x3e9   :  { %v489_v40 = vmul.f32 %v2357_v38, %v2349_v22 }
 0x3eb   :  { %v490_v41 = vpack.c.bf16 %v489_v40, %v488_v39 }
 0x3ed   :  { %1907 = vmatmul.msk.bf16.vlgmr.msra.gmra.mxu2 %vm447_vm8, %v490_v41  ;;  %v2323_v41 = vld [vmem:[#allocation11] ss:$0 sm:$0xff] }
 0x3ef   :  { %v549_v42 = vpop.xlane.xlu2 %548 }
 0x3f0   :  { %2358 = vrcp.f32 %v549_v42 }
 0x3f6   :  { %v2359_v45 = vpop.eup %2358 }
 0x3f7   :  { %v552_v43 = vpop.xlane.xlu2 %551  ;;  %v555_v47 = vmul.f32 %v2359_v45, %v2351_v29  ;;  %v2324_v45 = vld [vmem:[#allocation13] ss:$0 sm:$0xff] }
 0x3f8   :  { %2360 = vrcp.f32 %v552_v43 }
 0x3f9   :  { %v559_v44 = vpop.permute.xlu1 %558 }
 0x3fa   :  { %571 = vmatpush.bf16.msrb.mxu2 %v559_v44 }
 0x3fe   :  { %v2361_v46 = vpop.eup %2360 }
 0x3ff   :  { %v556_v48 = vmul.f32 %v2361_v46, %v2353_v32 }
 0x401   :  { %v557_v51 = vpack.c.bf16 %v556_v48, %v555_v47 }
 0x403   :  { %1909 = vmatmul.msk.bf16.vlgmr.msrb.gmra.mxu2 %vm447_vm8, %v557_v51 }
 0x470   :  { %v506_v53 = vpop.f32.mrf.mxu2 }
 0x478   :  { %v508_v54 = vpop.f32.mrf.mxu2 }
 0x486   :  { %v573_v55 = vpop.f32.mrf.mxu2 }
 0x48e   :  { %v575_v56 = vpop.f32.mrf.mxu2 }
 0x48f   :  { %v2309_v57 = vpack.i.bf16 %v575_v56, %v573_v55  ;;  %v2218_v55 = vld [vmem:[%s3349_s12 + $0x10] sm:$0xff]  ;;  %v2217_v56 = vld [vmem:[%s3349_s12 + $0x8] sm:$0xff] }
 0x491   :  { %2310 = vrot.lane.b32.xlu2 %v2309_v57, %s2861_s0  ;;  %v2216_v57 = vld [vmem:[%s3349_s12] sm:$0xff] }
 0x4eb   :  { %v2311_v59 = vpop.permute.xlu2 %2310 }
 0x4ec   :  { %v2313_v60 = vunpack.i.h.bf16 %v2311_v59  ;;  %v2312_v61 = vunpack.i.l.bf16 %v2311_v59 }
 0x4ee   :  { %v586_v62 = vsel %vm447_vm8, %v506_v53, %v2312_v61  ;;  %v587_v0 = vsel %vm447_vm8, %v508_v54, %v2313_v60  ;;  %v2219_v54 = vld [vmem:[%s3349_s12 + $0x18] sm:$0xff] }
 0x4ef   :  { %v588_v1 = vpack.c.bf16 %v587_v0, %v586_v62  ;;  %785 = vmatpush.bf16.msrb.mxu3 %v2219_v54 }
 0x4f1   :  { %1918 = vmatmul.msk.bf16.vlgmr.msra.gmra.mxu0 %vm341_vm0, %v588_v1 }
 0x4f3   :  { %786 = vmatpush.bf16.msrb.mxu3 %v2218_v55 }
 0x4f7   :  { %787 = vmatpush.bf16.msrb.mxu3 %v2217_v56 }
 0x4fb   :  { %788 = vmatpush.bf16.msrb.mxu3 %v2216_v57 }
 0x56e   :  { %v621_v4 = vpop.f32.mrf.mxu0 }
 0x56f   :  { %v622_v5 = vadd.f32 %v2322_v2, %v621_v4 }
 0x571   :  { %v626_v6 = vadd.f32 %v622_v5, %v3125_v49 }
 0x573   :  { %v630_v7 = vsel %vm341_vm0, %v626_v6, 0.0 }
 0x574   :  { %631 = vadd.xlane.f32.xlu0 %v630_v7 }
 0x576   :  { %v623_v8 = vpop.f32.mrf.mxu0 }
 0x577   :  { %v624_v9 = vadd.f32 %v2322_v2, %v623_v8 }
 0x579   :  { %v627_v11 = vadd.f32 %v624_v9, %v3127_v50  ;;  %v2215_v50 = vld [vmem:[#allocation14 + $0x8] sm:$0xff] }
 0x57a   :  { %714 = vmatpush.bf16.msra.mxu1 %v2215_v50 }
 0x57b   :  { %v633_v12 = vsel %vm341_vm0, %v627_v11, 0.0 }
 0x57c   :  { %634 = vadd.xlane.f32.xlu1 %v633_v12 }
 0x57e   :  { %715 = vmatpush.bf16.msra.mxu1 %v2214_v24 }
 0x5e7   :  { %v632_v13 = vpop.xlane.xlu0 %631 }
 0x5e8   :  { %v636_v14 = vmul.f32 %v632_v13, %v3108_v10 }
 0x5ea   :  { %v638_v15 = vsub.f32 %v626_v6, %v636_v14 }
 0x5ec   :  { %v640_v16 = vmul.f32 %v638_v15, %v638_v15 }
 0x5ee   :  { %v642_v17 = vsel %vm341_vm0, %v640_v16, 0.0 }
 0x5ef   :  { %v635_v18 = vpop.xlane.xlu1 %634  ;;  %643 = vadd.xlane.f32.xlu0 %v642_v17 }
 0x5f0   :  { %v637_v49 = vmul.f32 %v635_v18, %v3108_v10 }
 0x5f2   :  { %v639_v19 = vsub.f32 %v627_v11, %v637_v49 }
 0x5f4   :  { %v641_v20 = vmul.f32 %v639_v19, %v639_v19 }
 0x5f6   :  { %v645_v21 = vsel %vm341_vm0, %v641_v20, 0.0  ;;  %v2326_v20 = vld [vmem:[#allocation17] ss:$0 sm:$0xff] }
 0x5f7   :  { %646 = vadd.xlane.f32.xlu0 %v645_v21 }
 0x662   :  { %v644_v22 = vpop.xlane.xlu0 %643 }
 0x663   :  { %v648_v23 = vmul.f32 %v644_v22, %v3108_v10 }
 0x665   :  { %v650_v25 = vadd.f32 1e-12, %v648_v23 }
 0x667   :  { %2362 = vrsqrt.f32 %v650_v25  ;;  %vm658_vm10 = vweird.f32 %v650_v25 }
 0x66a   :  { %v647_v26 = vpop.xlane.xlu0 %646 }
 0x66b   :  { %v649_v27 = vmul.f32 %v647_v26, %v3108_v10 }
 0x66d   :  { %v2363_v28 = vpop.eup %2362  ;;  %v651_v29 = vadd.f32 1e-12, %v649_v27 }
 0x66e   :  { %v653_v30 = vmul.f32 %v2363_v28, %v650_v25  ;;  %vm659_vm9 = vweird.f32 %v2363_v28 }
 0x66f   :  { %2364 = vrsqrt.f32 %v651_v29  ;;  %vm660_vm11 = vmor %vm658_vm10, %vm659_vm9  ;;  %vm668_vm13 = vweird.f32 %v651_v29 }
 0x670   :  { %v654_v31 = vmul.f32 %v2363_v28, %v653_v30 }
 0x672   :  { %v655_v32 = vmul.f32 0.5, %v654_v31 }
 0x674   :  { %v656_v33 = vsub.f32 1.5, %v655_v32 }
 0x675   :  { %v2365_v34 = vpop.eup %2364 }
 0x676   :  { %v657_v35 = vmul.f32 %v2363_v28, %v656_v33  ;;  %v663_v36 = vmul.f32 %v2365_v34, %v651_v29  ;;  %vm669_vm12 = vweird.f32 %v2365_v34 }
 0x677   :  { %vm670_vm14 = vmor %vm668_vm13, %vm669_vm12 }
 0x678   :  { %v664_v37 = vmul.f32 %v2365_v34, %v663_v36  ;;  %v661_v38 = vsel %vm660_vm11, %v2363_v28, %v657_v35 }
 0x679   :  { %v672_v42 = vmul.f32 %v661_v38, %v638_v15  ;;  %v2221_v38 = vld [vmem:[%s3381_s5 + $0x18] sm:$0xff] }
 0x67a   :  { %v665_v39 = vmul.f32 0.5, %v664_v37  ;;  %885 = vmatpush.bf16.msra.mxu2 %v2221_v38 }
 0x67b   :  { %v677_v46 = vmul.f32 %v2323_v41, %v672_v42 }
 0x67c   :  { %v666_v40 = vsub.f32 1.5, %v665_v39 }
 0x67d   :  { %v682_v51 = vadd.f32 %v2324_v45, %v677_v46 }
 0x67e   :  { %v667_v43 = vmul.f32 %v2365_v34, %v666_v40 }
 0x680   :  { %v671_v44 = vsel %vm670_vm14, %v2365_v34, %v667_v43 }
 0x681   :  { %v673_v47 = vmul.f32 %v671_v44, %v639_v19 }
 0x683   :  { %v678_v48 = vmul.f32 %v2323_v41, %v673_v47  ;;  %v2220_v41 = vld [vmem:[%s3381_s5 + $0x10] sm:$0xff] }
 0x684   :  { %886 = vmatpush.bf16.msra.mxu2 %v2220_v41 }
 0x685   :  { %v683_v52 = vadd.f32 %v2324_v45, %v678_v48 }
 0x687   :  { %v684_v53 = vpack.c.bf16 %v683_v52, %v682_v51 }
 0x689   :  { %1927 = vmatmul.msk.bf16.vlgmr.msra.gmra.mxu1 %vm341_vm0, %v684_v53 }
 0x706   :  { %v717_v59 = vpop.f32.mrf.mxu1 }
 0x707   :  { %v718_v60 = vadd.f32 %v2325_v58, %v717_v59 }
 0x709   :  { %v724_v61 = vmul.f32 0.044715, %v718_v60  ;;  %v722_v15 = vmul.f32 0.5, %v718_v60 }
 0x70b   :  { %v726_v62 = vmul.f32 %v724_v61, %v718_v60 }
 0x70d   :  { %v728_v0 = vmul.f32 %v726_v62, %v718_v60 }
 0x70e   :  { %v719_v1 = vpop.f32.mrf.mxu1 }
 0x70f   :  { %v730_v2 = vadd.f32 %v728_v0, %v718_v60  ;;  %v720_v4 = vadd.f32 %v2325_v58, %v719_v1  ;;  %v2327_v60 = vld [vmem:[#allocation19] ss:$0 sm:$0xff]  ;;  %v2328_v1 = vld [vmem:[#allocation20] ss:$0 sm:$0xff] }
 0x711   :  { %v725_v5 = vmul.f32 0.044715, %v720_v4  ;;  %v732_v6 = vmul.f32 0.7978846, %v730_v2  ;;  %v723_v16 = vmul.f32 0.5, %v720_v4 }
 0x713   :  { %v727_v7 = vmul.f32 %v725_v5, %v720_v4  ;;  %2366 = vtanh.f32 %v732_v6 }
 0x715   :  { %v729_v8 = vmul.f32 %v727_v7, %v720_v4 }
 0x717   :  { %v731_v9 = vadd.f32 %v729_v8, %v720_v4 }
 0x719   :  { %v733_v11 = vmul.f32 0.7978846, %v731_v9  ;;  %v2367_v12 = vpop.eup %2366 }
 0x71a   :  { %v736_v13 = vadd.f32 1.0, %v2367_v12 }
 0x71b   :  { %2368 = vtanh.f32 %v733_v11  ;;  %v2329_v11 = vld [vmem:[#allocation7 + $0x1] ss:$0 sm:$0xff] }
 0x71c   :  { %v738_v18 = vmul.f32 %v736_v13, %v722_v15 }
 0x721   :  { %v2369_v14 = vpop.eup %2368 }
 0x722   :  { %v737_v17 = vadd.f32 1.0, %v2369_v14 }
 0x724   :  { %v739_v49 = vmul.f32 %v737_v17, %v723_v16 }
 0x726   :  { %v740_v19 = vpack.c.bf16 %v739_v49, %v738_v18 }
 0x728   :  { %1944 = vmatmul.msk.bf16.vlgmr.msrb.gmra.mxu3 %vm777_vm15, %v740_v19 }
 0x7ab   :  { %v790_v21 = vpop.f32.mrf.mxu3 }
 0x7ac   :  { %v791_v50 = vadd.f32 %v2326_v20, %v790_v21 }
 0x7ae   :  { %v795_v22 = vadd.f32 %v791_v50, %v682_v51 }
 0x7b0   :  { %v799_v23 = vsel %vm341_vm0, %v795_v22, 0.0 }
 0x7b1   :  { %800 = vadd.xlane.f32.xlu2 %v799_v23 }
 0x7b3   :  { %v792_v24 = vpop.f32.mrf.mxu3 }
 0x7b4   :  { %v793_v25 = vadd.f32 %v2326_v20, %v792_v24 }
 0x7b6   :  { %v796_v26 = vadd.f32 %v793_v25, %v683_v52 }
 0x7b8   :  { %v802_v27 = vsel %vm341_vm0, %v796_v26, 0.0 }
 0x7b9   :  { %803 = vadd.xlane.f32.xlu0 %v802_v27 }
 0x824   :  { %v801_v28 = vpop.xlane.xlu2 %800 }
 0x825   :  { %v805_v29 = vmul.f32 %v801_v28, %v3108_v10 }
 0x827   :  { %v807_v30 = vsub.f32 %v795_v22, %v805_v29 }
 0x829   :  { %v809_v31 = vmul.f32 %v807_v30, %v807_v30 }
 0x82b   :  { %v811_v32 = vsel %vm341_vm0, %v809_v31, 0.0 }
 0x82c   :  { %v804_v33 = vpop.xlane.xlu0 %803  ;;  %812 = vadd.xlane.f32.xlu0 %v811_v32 }
 0x82d   :  { %v806_v34 = vmul.f32 %v804_v33, %v3108_v10 }
 0x82f   :  { %v808_v35 = vsub.f32 %v796_v26, %v806_v34 }
 0x831   :  { %v810_v36 = vmul.f32 %v808_v35, %v808_v35 }
 0x833   :  { %v814_v37 = vsel %vm341_vm0, %v810_v36, 0.0 }
 0x834   :  { %815 = vadd.xlane.f32.xlu0 %v814_v37 }
 0x89f   :  { %v813_v39 = vpop.xlane.xlu0 %812 }
 0x8a0   :  { %v817_v40 = vmul.f32 %v813_v39, %v3108_v10 }
 0x8a2   :  { %v819_v42 = vadd.f32 1e-12, %v817_v40 }
 0x8a4   :  { %2370 = vrsqrt.f32 %v819_v42  ;;  %vm827_vm2 = vweird.f32 %v819_v42 }
 0x8a7   :  { %v816_v43 = vpop.xlane.xlu0 %815 }
 0x8a8   :  { %v818_v44 = vmul.f32 %v816_v43, %v3108_v10 }
 0x8aa   :  { %v2371_v45 = vpop.eup %2370  ;;  %v820_v46 = vadd.f32 1e-12, %v818_v44 }
 0x8ab   :  { %v822_v47 = vmul.f32 %v2371_v45, %v819_v42  ;;  %vm828_vm1 = vweird.f32 %v2371_v45 }
 0x8ac   :  { %2372 = vrsqrt.f32 %v820_v46  ;;  %vm829_vm3 = vmor %vm827_vm2, %vm828_vm1  ;;  %vm837_vm5 = vweird.f32 %v820_v46 }
 0x8ad   :  { %v823_v48 = vmul.f32 %v2371_v45, %v822_v47 }
 0x8af   :  { %v824_v51 = vmul.f32 0.5, %v823_v48 }
 0x8b1   :  { %v825_v52 = vsub.f32 1.5, %v824_v51 }
 0x8b2   :  { %v2373_v53 = vpop.eup %2372 }
 0x8b3   :  { %v826_v54 = vmul.f32 %v2371_v45, %v825_v52  ;;  %v832_v55 = vmul.f32 %v2373_v53, %v820_v46  ;;  %vm838_vm4 = vweird.f32 %v2373_v53 }
 0x8b4   :  { %vm839_vm6 = vmor %vm837_vm5, %vm838_vm4  ;;  %vm1314_vm4 = vcmask 1040384  }
 0x8b5   :  { %v833_v56 = vmul.f32 %v2373_v53, %v832_v55  ;;  %v830_v57 = vsel %vm829_vm3, %v2371_v45, %v826_v54 }
 0x8b6   :  { %v841_v61 = vmul.f32 %v830_v57, %v807_v30 }
 0x8b7   :  { %v834_v58 = vmul.f32 0.5, %v833_v56 }
 0x8b8   :  { %v846_v2 = vmul.f32 %v2327_v60, %v841_v61 }
 0x8b9   :  { %v835_v59 = vsub.f32 1.5, %v834_v58 }
 0x8ba   :  { %v3209_v6 = vadd.f32 %v2328_v1, %v846_v2 }
 0x8bb   :  { %v836_v62 = vmul.f32 %v2373_v53, %v835_v59 }
 0x8bd   :  { %v840_v0 = vsel %vm839_vm6, %v2373_v53, %v836_v62 }
 0x8be   :  { %v842_v4 = vmul.f32 %v840_v0, %v808_v35 }
 0x8c0   :  { %v847_v5 = vmul.f32 %v2327_v60, %v842_v4 }
 0x8c2   :  { %v3211_v7 = vadd.f32 %v2328_v1, %v847_v5  ;;  %v2223_v5 = vld [vmem:[#allocation8 + $0x18] sm:$0xff] }
 0x8c4   :  { %v853_v8 = vpack.c.bf16 %v3211_v7, %v3209_v6 }
 0x8c6   :  { %1957 = vmatmul.msk.bf16.vlgmr.msra.gmra.mxu2 %vm341_vm0, %v853_v8 }
 0x949   :  { %v888_v9 = vpop.f32.mrf.mxu2 }
 0x94a   :  { %v889_v13 = vadd.f32 %v2329_v11, %v888_v9 }
 0x951   :  { %v890_v12 = vpop.f32.mrf.mxu2 }
 0x952   :  { %v891_v14 = vadd.f32 %v2329_v11, %v890_v12  ;;  %v2222_v12 = vld [vmem:[#allocation8 + $0x10] sm:$0xff] }
 0x954   :  { %v893_v15 = vpack.c.bf16 %v891_v14, %v889_v13 }
 0x956   :  { %895 = vrot.lane.b32.xlu2 %v893_v15, %s2881_s26  ;;  %960 = vrot.lane.b32.xlu0 %v893_v15, %s2880_s14 }
 0x957   :  { %962 = vrot.lane.b32.xlu1 %v893_v15, %s2882_s6 }
 0x9b0   :  { %v896_v16 = vpop.permute.xlu2 %895 }
 0x9b1   :  { %v901_v17 = vsel %vm447_vm8, %v896_v16, 0 }
 0x9b2   :  { %910 = vmatpush.bf16.xpose.msrb.mxu0 %v901_v17 }
 0x9b9   :  { %1958 = vmatmul.msk.bf16.vlgmr.msrb.gmra.mxu0 %vm447_vm8, %v893_v15 }
 0x9ba   :  { %1069 = vmatpush.bf16.msra.mxu0 %v2223_v5  ;;  %v2229_v5 = vld [vmem:[%s3349_s12 + $0x38] sm:$0xff] }
 0x9be   :  { %1070 = vmatpush.bf16.msra.mxu0 %v2222_v12  ;;  %v2333_v12 = vld [vmem:[#allocation16 + $0x1] ss:$0 sm:$0xff] }
 0x9c8   :  { %v961_v19 = vpop.permute.xlu0 %960 }
 0x9c9   :  { %v963_v18 = vpop.permute.xlu1 %962 }
 0x9ca   :  { %v968_v49 = vsel %vm447_vm8, %v963_v18, 0 }
 0x9cb   :  { %977 = vmatpush.bf16.xpose.msra.mxu3 %v968_v49 }
 0x9d2   :  { %1960 = vmatmul.msk.bf16.vlgmr.msra.gmra.mxu3 %vm447_vm8, %v961_v19 }
 0x9d3   :  { %1241 = vmatpush.bf16.msrb.mxu3 %v2229_v5 }
 0xa36   :  { %v912_v20 = vpop.f32.mrf.mxu0 }
 0xa37   :  { %v913_v21 = vadd.f32 %v912_v20, %v3145_v63  ;;  %v2330_v20 = vld [vmem:[#allocation10 + $0x1] ss:$0 sm:$0xff] }
 0xa39   :  { %v917_v50 = vsel %vm447_vm8, %v913_v21, -inf }
 0xa3a   :  { %918 = vmax.xlane.f32.xlu2 %v917_v50 }
 0xa3e   :  { %v914_v25 = vpop.f32.mrf.mxu0 }
 0xa3f   :  { %v915_v26 = vadd.f32 %v914_v25, %v3149_v3 }
 0xa41   :  { %v920_v30 = vsel %vm447_vm8, %v915_v26, -inf }
 0xa55   :  { %v979_v22 = vpop.f32.mrf.mxu3 }
 0xa56   :  { %v980_v23 = vadd.f32 %v979_v22, %v3145_v63 }
 0xa58   :  { %v984_v24 = vsel %vm447_vm8, %v980_v23, -inf }
 0xa59   :  { %985 = vmax.xlane.f32.xlu0 %v984_v24 }
 0xa5d   :  { %v981_v27 = vpop.f32.mrf.mxu3 }
 0xa5e   :  { %v982_v28 = vadd.f32 %v981_v27, %v3149_v3 }
 0xa60   :  { %v987_v29 = vsel %vm447_vm8, %v982_v28, -inf }
 0xa61   :  { %988 = vmax.xlane.f32.xlu1 %v987_v29  ;;  %921 = vmax.xlane.f32.xlu0 %v920_v30 }
 0xaad   :  { %v919_v31 = vpop.xlane.xlu2 %918 }
 0xaae   :  { %v923_v32 = vsub.f32 %v913_v21, %v919_v31 }
 0xab0   :  { %v925_v33 = vmul.f32 1.442695, %v923_v32 }
 0xab2   :  { %2374 = vpow2.f32 %v925_v33 }
 0xab8   :  { %v2375_v63 = vpop.eup %2374 }
 0xab9   :  { %v929_v34 = vsel %vm447_vm8, %v2375_v63, 0.0 }
 0xaba   :  { %930 = vadd.xlane.f32.xlu2 %v929_v34 }
 0xacc   :  { %v986_v35 = vpop.xlane.xlu0 %985 }
 0xacd   :  { %v990_v36 = vsub.f32 %v980_v23, %v986_v35 }
 0xacf   :  { %v992_v37 = vmul.f32 1.442695, %v990_v36 }
 0xad1   :  { %2376 = vpow2.f32 %v992_v37 }
 0xad2   :  { %940 = vrot.lane.b32.xlu2 %v893_v15, %s2858_s8 }
 0xad4   :  { %v989_v3 = vpop.xlane.xlu1 %988  ;;  %v922_v38 = vpop.xlane.xlu0 %921 }
 0xad5   :  { %v991_v39 = vsub.f32 %v982_v28, %v989_v3  ;;  %v924_v42 = vsub.f32 %v915_v26, %v922_v38  ;;  %v2224_v38 = vld [vmem:[#allocation14 + $0x10] sm:$0xff] }
 0xad7   :  { %v2377_v40 = vpop.eup %2376  ;;  %v994_v41 = vmul.f32 1.442695, %v991_v39  ;;  %v927_v44 = vmul.f32 1.442695, %v924_v42 }
 0xad8   :  { %v996_v43 = vsel %vm447_vm8, %v2377_v40, 0.0 }
 0xad9   :  { %2378 = vpow2.f32 %v994_v41  ;;  %997 = vadd.xlane.f32.xlu1 %v996_v43 }
 0xada   :  { %2380 = vpow2.f32 %v927_v44 }
 0xadf   :  { %v2379_v45 = vpop.eup %2378 }
 0xae0   :  { %v999_v46 = vsel %vm447_vm8, %v2379_v45, 0.0  ;;  %v2381_v47 = vpop.eup %2380 }
 0xae1   :  { %1000 = vadd.xlane.f32.xlu0 %v999_v46  ;;  %v932_v48 = vsel %vm447_vm8, %v2381_v47, 0.0 }
 0xae9   :  { %933 = vadd.xlane.f32.xlu0 %v932_v48 }
 0xaf2   :  { %1007 = vrot.lane.b32.xlu1 %v893_v15, %s2883_s20  ;;  %s2884_s20 = smov [#allocation29]  }
 0xaf3   :  { %s1877_s27 = sshll.u32 %s2884_s20, 4  ;;  %s1878_s27 = int_to_ptr.vmem [resolvable:$true] %s1877_s27 }
 0xb2d   :  { %v931_v51 = vpop.xlane.xlu2 %930 }
 0xb35   :  { %v941_v52 = vpop.permute.xlu2 %940 }
 0xb36   :  { %953 = vmatpush.bf16.msrb.mxu1 %v941_v52 }
 0xb4c   :  { %v998_v54 = vpop.xlane.xlu1 %997 }
 0xb54   :  { %v1001_v53 = vpop.xlane.xlu0 %1000 }
 0xb55   :  { %2382 = vrcp.f32 %v1001_v53 }
 0xb56   :  { %2384 = vrcp.f32 %v931_v51 }
 0xb57   :  { %2386 = vrcp.f32 %v998_v54 }
 0xb5b   :  { %v2383_v56 = vpop.eup %2382 }
 0xb5c   :  { %v934_v55 = vpop.xlane.xlu0 %933  ;;  %v2385_v57 = vpop.eup %2384  ;;  %v1005_v59 = vmul.f32 %v2383_v56, %v2379_v45  ;;  %v2331_v56 = vld [vmem:[#allocation11 + $0x1] ss:$0 sm:$0xff] }
 0xb5d   :  { %2388 = vrcp.f32 %v934_v55  ;;  %v2387_v58 = vpop.eup %2386  ;;  %v937_v61 = vmul.f32 %v2385_v57, %v2375_v63 }
 0xb5e   :  { %v1004_v62 = vmul.f32 %v2387_v58, %v2377_v40 }
 0xb60   :  { %v1006_v2 = vpack.c.bf16 %v1005_v59, %v1004_v62 }
 0xb63   :  { %v2389_v60 = vpop.eup %2388 }
 0xb64   :  { %v938_v0 = vmul.f32 %v2389_v60, %v2381_v47  ;;  %v1008_v1 = vpop.permute.xlu1 %1007  ;;  %v2332_v60 = vld [vmem:[#allocation13 + $0x1] ss:$0 sm:$0xff] }
 0xb65   :  { %1020 = vmatpush.bf16.msrb.mxu2 %v1008_v1 }
 0xb66   :  { %v939_v4 = vpack.c.bf16 %v938_v0, %v937_v61 }
 0xb68   :  { %1959 = vmatmul.msk.bf16.vlgmr.msrb.gmra.mxu1 %vm447_vm8, %v939_v4  ;;  %1961 = vmatmul.msk.bf16.vlgmr.msrb.gmra.mxu2 %vm447_vm8, %v1006_v2 }
 0xbe5   :  { %v955_v13 = vpop.f32.mrf.mxu1 }
 0xbeb   :  { %v1022_v8 = vpop.f32.mrf.mxu2 }
 0xbed   :  { %v957_v17 = vpop.f32.mrf.mxu1 }
 0xbf3   :  { %v1024_v9 = vpop.f32.mrf.mxu2 }
 0xbf4   :  { %v2314_v11 = vpack.i.bf16 %v1024_v9, %v1022_v8  ;;  %v2228_v8 = vld [vmem:[%s3349_s12 + $0x30] sm:$0xff]  ;;  %v2227_v9 = vld [vmem:[%s3349_s12 + $0x28] sm:$0xff] }
 0xbf5   :  { %1242 = vmatpush.bf16.msrb.mxu3 %v2228_v8 }
 0xbf6   :  { %2315 = vrot.lane.b32.xlu0 %v2314_v11, %s2861_s0  ;;  %v2226_v11 = vld [vmem:[%s3349_s12 + $0x20] sm:$0xff] }
 0xbf9   :  { %1243 = vmatpush.bf16.msrb.mxu3 %v2227_v9 }
 0xbfd   :  { %1244 = vmatpush.bf16.msrb.mxu3 %v2226_v11 }
 0xc68   :  { %v2316_v14 = vpop.permute.xlu0 %2315 }
 0xc69   :  { %v2318_v15 = vunpack.i.h.bf16 %v2316_v14  ;;  %v2317_v16 = vunpack.i.l.bf16 %v2316_v14 }
 0xc6b   :  { %v1036_v18 = vsel %vm447_vm8, %v957_v17, %v2318_v15  ;;  %v1035_v49 = vsel %vm447_vm8, %v955_v13, %v2317_v16 }
 0xc6c   :  { %v1037_v19 = vpack.c.bf16 %v1036_v18, %v1035_v49 }
 0xc6e   :  { %1970 = vmatmul.msk.bf16.vlgmr.msra.gmra.mxu0 %vm341_vm0, %v1037_v19 }
 0xceb   :  { %v1072_v21 = vpop.f32.mrf.mxu0 }
 0xcec   :  { %v1073_v50 = vadd.f32 %v2330_v20, %v1072_v21 }
 0xcee   :  { %v1077_v22 = vadd.f32 %v1073_v50, %v3209_v6 }
 0xcf0   :  { %v1083_v23 = vsel %vm341_vm0, %v1077_v22, 0.0 }
 0xcf1   :  { %1084 = vadd.xlane.f32.xlu1 %v1083_v23 }
 0xcf3   :  { %v1074_v24 = vpop.f32.mrf.mxu0 }
 0xcf4   :  { %v1075_v25 = vadd.f32 %v2330_v20, %v1074_v24 }
 0xcf6   :  { %v1078_v26 = vadd.f32 %v1075_v25, %v3211_v7  ;;  %v2225_v7 = vld [vmem:[#allocation14 + $0x18] sm:$0xff] }
 0xcf7   :  { %1169 = vmatpush.bf16.msra.mxu1 %v2225_v7 }
 0xcf8   :  { %v1086_v27 = vsel %vm341_vm0, %v1078_v26, 0.0 }
 0xcf9   :  { %1087 = vadd.xlane.f32.xlu0 %v1086_v27 }
 0xcfb   :  { %1170 = vmatpush.bf16.msra.mxu1 %v2224_v38 }
 0xd64   :  { %v1085_v28 = vpop.xlane.xlu1 %1084 }
 0xd65   :  { %v1089_v29 = vmul.f32 %v1085_v28, %v3108_v10 }
 0xd67   :  { %v1091_v30 = vsub.f32 %v1077_v22, %v1089_v29 }
 0xd69   :  { %v1093_v31 = vmul.f32 %v1091_v30, %v1091_v30 }
 0xd6b   :  { %v1095_v32 = vsel %vm341_vm0, %v1093_v31, 0.0 }
 0xd6c   :  { %v1088_v33 = vpop.xlane.xlu0 %1087  ;;  %1096 = vadd.xlane.f32.xlu2 %v1095_v32 }
 0xd6d   :  { %v1090_v6 = vmul.f32 %v1088_v33, %v3108_v10 }
 0xd6f   :  { %v1092_v63 = vsub.f32 %v1078_v26, %v1090_v6  ;;  %v2334_v6 = vld [vmem:[#allocation17 + $0x1] ss:$0 sm:$0xff] }
 0xd71   :  { %v1094_v34 = vmul.f32 %v1092_v63, %v1092_v63 }
 0xd73   :  { %v1098_v35 = vsel %vm341_vm0, %v1094_v34, 0.0 }
 0xd74   :  { %1099 = vadd.xlane.f32.xlu1 %v1098_v35 }
 0xddf   :  { %v1097_v36 = vpop.xlane.xlu2 %1096 }
 0xde0   :  { %v1101_v37 = vmul.f32 %v1097_v36, %v3108_v10 }
 0xde2   :  { %v1103_v3 = vadd.f32 1e-12, %v1101_v37 }
 0xde4   :  { %2390 = vrsqrt.f32 %v1103_v3  ;;  %vm1111_vm8 = vweird.f32 %v1103_v3 }
 0xde7   :  { %v1100_v39 = vpop.xlane.xlu1 %1099 }
 0xde8   :  { %v1102_v40 = vmul.f32 %v1100_v39, %v3108_v10 }
 0xdea   :  { %v2391_v41 = vpop.eup %2390  ;;  %v1104_v42 = vadd.f32 1e-12, %v1102_v40 }
 0xdeb   :  { %v1106_v43 = vmul.f32 %v2391_v41, %v1103_v3  ;;  %vm1112_vm7 = vweird.f32 %v2391_v41 }
 0xdec   :  { %2392 = vrsqrt.f32 %v1104_v42  ;;  %vm1113_vm9 = vmor %vm1111_vm8, %vm1112_vm7  ;;  %vm1121_vm11 = vweird.f32 %v1104_v42 }
 0xded   :  { %v1107_v44 = vmul.f32 %v2391_v41, %v1106_v43 }
 0xdef   :  { %v1108_v45 = vmul.f32 0.5, %v1107_v44 }
 0xdf1   :  { %v1109_v46 = vsub.f32 1.5, %v1108_v45 }
 0xdf2   :  { %v2393_v47 = vpop.eup %2392 }
 0xdf3   :  { %v1110_v48 = vmul.f32 %v2391_v41, %v1109_v46  ;;  %v1116_v51 = vmul.f32 %v2393_v47, %v1104_v42  ;;  %vm1122_vm10 = vweird.f32 %v2393_v47 }
 0xdf4   :  { %vm1123_vm12 = vmor %vm1121_vm11, %vm1122_vm10 }
 0xdf5   :  { %v1117_v52 = vmul.f32 %v2393_v47, %v1116_v51  ;;  %v1114_v53 = vsel %vm1113_vm9, %v2391_v41, %v1110_v48 }
 0xdf6   :  { %v1125_v57 = vmul.f32 %v1114_v53, %v1091_v30  ;;  %v2231_v53 = vld [vmem:[#allocation22 + $0x8] sm:$0xff] }
 0xdf7   :  { %v1118_v54 = vmul.f32 0.5, %v1117_v52  ;;  %1346 = vmatpush.bf16.msra.mxu2 %v2231_v53  ;;  %v2253_v53 = vld [vmem:[#allocation26 + $0x68] sm:$0xff] }
 0xdf8   :  { %v1130_v61 = vmul.f32 %v2331_v56, %v1125_v57 }
 0xdf9   :  { %v1119_v55 = vsub.f32 1.5, %v1118_v54 }
 0xdfa   :  { %v1135_v1 = vadd.f32 %v2332_v60, %v1130_v61 }
 0xdfb   :  { %v1120_v58 = vmul.f32 %v2393_v47, %v1119_v55  ;;  %v2230_v55 = vld [vmem:[#allocation22] sm:$0xff] }
 0xdfc   :  { %1347 = vmatpush.bf16.msra.mxu2 %v2230_v55  ;;  %v2269_v55 = vld [vmem:[#allocation26 + $0xe8] sm:$0xff] }
 0xdfd   :  { %v1124_v59 = vsel %vm1123_vm12, %v2393_v47, %v1120_v58 }
 0xdfe   :  { %v1126_v62 = vmul.f32 %v1124_v59, %v1092_v63 }
 0xe00   :  { %v1131_v0 = vmul.f32 %v2331_v56, %v1126_v62 }
 0xe02   :  { %v1136_v2 = vadd.f32 %v2332_v60, %v1131_v0 }
 0xe04   :  { %v1137_v4 = vpack.c.bf16 %v1136_v2, %v1135_v1 }
 0xe06   :  { %1979 = vmatmul.msk.bf16.vlgmr.msra.gmra.mxu1 %vm341_vm0, %v1137_v4 }
 0xe83   :  { %v1172_v13 = vpop.f32.mrf.mxu1 }
 0xe84   :  { %v1173_v14 = vadd.f32 %v2333_v12, %v1172_v13 }
 0xe86   :  { %v1179_v15 = vmul.f32 0.044715, %v1173_v14  ;;  %v1177_v28 = vmul.f32 0.5, %v1173_v14 }
 0xe88   :  { %v1181_v16 = vmul.f32 %v1179_v15, %v1173_v14 }
 0xe8a   :  { %v1183_v17 = vmul.f32 %v1181_v16, %v1173_v14  ;;  %v2336_v16 = vld [vmem:[#allocation20 + $0x1] ss:$0 sm:$0xff] }
 0xe8b   :  { %v1174_v18 = vpop.f32.mrf.mxu1 }
 0xe8c   :  { %v1185_v49 = vadd.f32 %v1183_v17, %v1173_v14  ;;  %v1175_v19 = vadd.f32 %v2333_v12, %v1174_v18 }
 0xe8e   :  { %v1180_v20 = vmul.f32 0.044715, %v1175_v19  ;;  %v1187_v21 = vmul.f32 0.7978846, %v1185_v49  ;;  %v1178_v29 = vmul.f32 0.5, %v1175_v19 }
 0xe90   :  { %v1182_v50 = vmul.f32 %v1180_v20, %v1175_v19  ;;  %2394 = vtanh.f32 %v1187_v21 }
 0xe92   :  { %v1184_v22 = vmul.f32 %v1182_v50, %v1175_v19 }
 0xe94   :  { %v1186_v23 = vadd.f32 %v1184_v22, %v1175_v19  ;;  %v2032_v22 = vld [vmem:[%s3355_s18 + $0x20] sm:$0xf] }
 0xe96   :  { %v1188_v24 = vmul.f32 0.7978846, %v1186_v23  ;;  %v2395_v25 = vpop.eup %2394  ;;  %v2238_v23 = vld [vmem:[%s3355_s18 + $0x2c] sm:$0xf0] }
 0xe97   :  { %v1191_v26 = vadd.f32 1.0, %v2395_v25  ;;  %v2033_v25 = vor.u32 %v2238_v23, %v2032_v22  ;;  %v2277_v22 = vld [vmem:[#allocation28 + $0x28] sm:$0xff]  ;;  %v1363_v23 = vld [vmem:[#allocation25] sm:$0xf] }
 0xe98   :  { %2396 = vtanh.f32 %v1188_v24  ;;  %v2236_v24 = vld [vmem:[%s3355_s18 + $0x24] sm:$0xf] }
 0xe99   :  { %v1193_v31 = vmul.f32 %v1191_v26, %v1177_v28  ;;  %v2034_v26 = vld [vmem:[%s3355_s18 + $0x30] sm:$0xf0]  ;;  %v2239_v28 = vld [vmem:[%s3355_s18 + $0x34] sm:$0xf0]  ;;  %1422 = vmatpush.bf16.msrb.mxu0 %v2033_v25  ;;  %v1366_v25 = vperm.slane %v1363_v23, 1 }
 0xe9e   :  { %v2397_v27 = vpop.eup %2396 }
 0xe9f   :  { %v1192_v30 = vadd.f32 1.0, %v2397_v27  ;;  %v2040_v27 = vld [vmem:[%s3355_s18 + $0x28] sm:$0xf] }
 0xea1   :  { %v1194_v32 = vmul.f32 %v1192_v30, %v1178_v29  ;;  %v2037_v29 = vor.u32 %v2236_v24, %v2034_v26  ;;  %v2041_v30 = vor.u32 %v2239_v28, %v2040_v27  ;;  %v1365_v24 = vperm.slane %v1363_v23, 0 }
 0xea3   :  { %v1195_v33 = vpack.c.bf16 %v1194_v32, %v1193_v31  ;;  %v2237_v31 = vld [vmem:[%s3355_s18 + $0x2c] sm:$0xf]  ;;  %v2042_v32 = vld [vmem:[%s3355_s18 + $0x38] sm:$0xf0]  ;;  %1435 = vmatpush.bf16.msrb.mxu1 %v2037_v29  ;;  %1448 = vmatpush.bf16.msra.mxu3 %v2041_v30 }
 0xea5   :  { %2004 = vmatmul.msk.bf16.vlgmr.msrb.gmra.mxu3 %vm777_vm15, %v1195_v33  ;;  %v2045_v33 = vor.u32 %v2237_v31, %v2042_v32  ;;  %v1367_v32 = vperm.slane %v1363_v23, 2 }
 0xea7   :  { %1461 = vmatpush.bf16.msrb.mxu2 %v2045_v33  ;;  %v1368_v33 = vperm.slane %v1363_v23, 3 }
 0xf28   :  { %v1246_v63 = vpop.f32.mrf.mxu3 }
 0xf29   :  { %v1247_v34 = vadd.f32 %v2334_v6, %v1246_v63  ;;  %v2234_v63 = vld [vmem:[%s3355_s18 + $0xc] sm:$0xf0] }
 0xf2b   :  { %v1251_v35 = vadd.f32 %v1247_v34, %v1135_v1  ;;  %v2232_v34 = vld [vmem:[%s3355_s18 + $0x4] sm:$0xf] }
 0xf2d   :  { %v1257_v7 = vsel %vm341_vm0, %v1251_v35, 0.0 }
 0xf2e   :  { %1258 = vadd.xlane.f32.xlu0 %v1257_v7  ;;  %v2018_v7 = vld [vmem:[%s3355_s18 + $0x10] sm:$0xf0] }
 0xf30   :  { %v1248_v36 = vpop.f32.mrf.mxu3 }
 0xf31   :  { %v1249_v37 = vadd.f32 %v2334_v6, %v1248_v36  ;;  %v2016_v6 = vld [vmem:[%s3355_s18] sm:$0xf]  ;;  %v2024_v36 = vld [vmem:[%s3355_s18 + $0x8] sm:$0xf] }
 0xf33   :  { %v1252_v3 = vadd.f32 %v1249_v37, %v1136_v2  ;;  %v2235_v37 = vld [vmem:[%s3355_s18 + $0x14] sm:$0xf0] }
 0xf35   :  { %v1260_v38 = vsel %vm341_vm0, %v1252_v3, 0.0 }
 0xf36   :  { %1261 = vadd.xlane.f32.xlu1 %v1260_v38  ;;  %v2025_v38 = vor.u32 %v2235_v37, %v2024_v36 }
 0xf38   :  { %1449 = vmatpush.bf16.msra.mxu3 %v2025_v38 }
 0xfa1   :  { %v1259_v39 = vpop.xlane.xlu0 %1258 }
 0xfa2   :  { %v1263_v40 = vmul.f32 %v1259_v39, %v3108_v10  ;;  %v2233_v39 = vld [vmem:[%s3355_s18 + $0xc] sm:$0xf] }
 0xfa4   :  { %v1265_v41 = vsub.f32 %v1251_v35, %v1263_v40  ;;  %v2017_v35 = vor.u32 %v2234_v63, %v2016_v6  ;;  %v2026_v40 = vld [vmem:[%s3355_s18 + $0x18] sm:$0xf0] }
 0xfa6   :  { %v1267_v42 = vmul.f32 %v1265_v41, %v1265_v41  ;;  %1423 = vmatpush.bf16.msrb.mxu0 %v2017_v35 }
 0xfa8   :  { %v1269_v43 = vsel %vm341_vm0, %v1267_v42, 0.0  ;;  %v2247_v42 = vld [vmem:[#allocation26 + $0x38] sm:$0xff] }
 0xfa9   :  { %v1262_v44 = vpop.xlane.xlu1 %1261  ;;  %1270 = vadd.xlane.f32.xlu1 %v1269_v43  ;;  %v2255_v43 = vld [vmem:[#allocation26 + $0x78] sm:$0xff] }
 0xfaa   :  { %v1264_v45 = vmul.f32 %v1262_v44, %v3108_v10  ;;  %v2263_v44 = vld [vmem:[#allocation26 + $0xb8] sm:$0xff]  ;;  %1736 = vmatpush.bf16.msra.mxu0 %v2247_v42 }
 0xfab   :  { %1762 = vmatpush.bf16.msrb.mxu3 %v2263_v44  ;;  %v2276_v44 = vld [vmem:[#allocation28 + $0x20] sm:$0xff] }
 0xfac   :  { %v1266_v46 = vsub.f32 %v1252_v3, %v1264_v45  ;;  %v2021_v3 = vor.u32 %v2232_v34, %v2018_v7  ;;  %v2271_v45 = vld [vmem:[#allocation26 + $0xf8] sm:$0xff] }
 0xfae   :  { %v1268_v47 = vmul.f32 %v1266_v46, %v1266_v46  ;;  %1436 = vmatpush.bf16.msrb.mxu1 %v2021_v3 }
 0xfb0   :  { %v1272_v48 = vsel %vm341_vm0, %v1268_v47, 0.0  ;;  %v2254_v47 = vld [vmem:[#allocation26 + $0x70] sm:$0xff] }
 0xfb1   :  { %1273 = vadd.xlane.f32.xlu2 %v1272_v48  ;;  %v2262_v48 = vld [vmem:[#allocation26 + $0xb0] sm:$0xff] }
 0xfb2   :  { %1749 = vmatpush.bf16.msra.mxu1 %v2255_v43  ;;  %1763 = vmatpush.bf16.msrb.mxu3 %v2262_v48  ;;  %v2272_v48 = vld [vmem:[#allocation28] sm:$0xff] }
 0xfb6   :  { %1750 = vmatpush.bf16.msra.mxu1 %v2254_v47  ;;  %v2273_v47 = vld [vmem:[#allocation28 + $0x8] sm:$0xff] }
 0xfba   :  { %1751 = vmatpush.bf16.msra.mxu1 %v2253_v53  ;;  %v2338_v53 = vld [vmem:[%s3358_s21] ss:$0 sm:$0xff] }
0x101c   :  { %v1271_v51 = vpop.xlane.xlu1 %1270 }
0x101d   :  { %v1275_v52 = vmul.f32 %v1271_v51, %v3108_v10  ;;  %v2270_v51 = vld [vmem:[#allocation26 + $0xf0] sm:$0xff] }
0x101f   :  { %v1277_v54 = vadd.f32 1e-12, %v1275_v52  ;;  %v2245_v52 = vld [vmem:[#allocation26 + $0x28] sm:$0xff] }
0x1021   :  { %2398 = vrsqrt.f32 %v1277_v54  ;;  %vm1285_vm14 = vweird.f32 %v1277_v54 }
0x1024   :  { %v1274_v56 = vpop.xlane.xlu2 %1273 }
0x1025   :  { %v1276_v57 = vmul.f32 %v1274_v56, %v3108_v10  ;;  %v2335_v10 = vld [vmem:[#allocation19 + $0x1] ss:$0 sm:$0xff] }
0x1026   :  { %v2244_v56 = vld [vmem:[#allocation26 + $0x20] sm:$0xff] }
0x1027   :  { %v2399_v58 = vpop.eup %2398  ;;  %v1278_v59 = vadd.f32 1e-12, %v1276_v57  ;;  %v2252_v57 = vld [vmem:[#allocation26 + $0x60] sm:$0xff] }
0x1028   :  { %v1280_v60 = vmul.f32 %v2399_v58, %v1277_v54  ;;  %vm1286_vm13 = vweird.f32 %v2399_v58  ;;  %v2261_v54 = vld [vmem:[#allocation26 + $0xa8] sm:$0xff]  ;;  %1752 = vmatpush.bf16.msra.mxu1 %v2252_v57 }
0x1029   :  { %2400 = vrsqrt.f32 %v1278_v59  ;;  %vm1287_vm15 = vmor %vm1285_vm14, %vm1286_vm13  ;;  %vm1295_vm2 = vweird.f32 %v1278_v59  ;;  %1764 = vmatpush.bf16.msrb.mxu3 %v2261_v54 }
0x102a   :  { %v1281_v61 = vmul.f32 %v2399_v58, %v1280_v60  ;;  %v2243_v60 = vld [vmem:[#allocation26 + $0x18] sm:$0xff] }
0x102c   :  { %v1282_v62 = vmul.f32 0.5, %v1281_v61  ;;  %v2251_v61 = vld [vmem:[#allocation26 + $0x58] sm:$0xff] }
0x102d   :  { %1753 = vmatpush.bf16.msra.mxu1 %v2251_v61 }
0x102e   :  { %v1283_v0 = vsub.f32 1.5, %v1282_v62  ;;  %v2259_v62 = vld [vmem:[#allocation26 + $0x98] sm:$0xff] }
0x102f   :  { %v2401_v1 = vpop.eup %2400 }
0x1030   :  { %v1290_v2 = vmul.f32 %v2401_v1, %v1278_v59  ;;  %v1284_v4 = vmul.f32 %v2399_v58, %v1283_v0  ;;  %vm1296_vm1 = vweird.f32 %v2401_v1  ;;  %v2268_v59 = vld [vmem:[#allocation26 + $0xe0] sm:$0xff]  ;;  %v2267_v0 = vld [vmem:[#allocation26 + $0xd8] sm:$0xff] }
0x1031   :  { %vm1297_vm3 = vmor %vm1295_vm2, %vm1296_vm1 }
0x1032   :  { %v1291_v5 = vmul.f32 %v2401_v1, %v1290_v2  ;;  %v1288_v9 = vsel %vm1287_vm15, %v2399_v58, %v1284_v4  ;;  %v2260_v58 = vld [vmem:[#allocation26 + $0xa0] sm:$0xff]  ;;  %v2242_v2 = vld [vmem:[#allocation26 + $0x10] sm:$0xff] }
0x1033   :  { %v1299_v13 = vmul.f32 %v1288_v9, %v1265_v41  ;;  %v2029_v41 = vor.u32 %v2233_v39, %v2026_v40  ;;  %1765 = vmatpush.bf16.msrb.mxu3 %v2260_v58  ;;  %v2250_v4 = vld [vmem:[#allocation26 + $0x50] sm:$0xff] }
0x1034   :  { %v1292_v8 = vmul.f32 0.5, %v1291_v5  ;;  %1754 = vmatpush.bf16.msra.mxu1 %v2250_v4  ;;  %v2339_v4 = vld [vmem:[%s3360_s23] ss:$0 sm:$0xff] }
0x1035   :  { %v1304_v17 = vmul.f32 %v2335_v10, %v1299_v13  ;;  %1462 = vmatpush.bf16.msrb.mxu2 %v2029_v41  ;;  %v2249_v13 = vld [vmem:[#allocation26 + $0x48] sm:$0xff] }
0x1036   :  { %v1293_v11 = vsub.f32 1.5, %v1292_v8 }
0x1037   :  { %v1309_v19 = vadd.f32 %v2336_v16, %v1304_v17  ;;  %1766 = vmatpush.bf16.msrb.mxu3 %v2259_v62  ;;  %v2248_v17 = vld [vmem:[#allocation26 + $0x40] sm:$0xff] }
0x1038   :  { %v1294_v12 = vmul.f32 %v2401_v1, %v1293_v11  ;;  %1755 = vmatpush.bf16.msra.mxu1 %v2249_v13 }
0x103a   :  { %v1298_v14 = vsel %vm1297_vm3, %v2401_v1, %v1294_v12  ;;  %v2337_v1 = vld [vmem:[#allocation23] ss:$0 sm:$0xff] }
0x103b   :  { %v1300_v15 = vmul.f32 %v1298_v14, %v1266_v46  ;;  %v2246_v46 = vld [vmem:[#allocation26 + $0x30] sm:$0xff] }
0x103c   :  { %1737 = vmatpush.bf16.msra.mxu0 %v2246_v46  ;;  %v2258_v14 = vld [vmem:[#allocation26 + $0x90] sm:$0xff]  ;;  %1756 = vmatpush.bf16.msra.mxu1 %v2248_v17 }
0x103d   :  { %v1305_v18 = vmul.f32 %v2335_v10, %v1300_v15  ;;  %v2241_v10 = vld [vmem:[#allocation26 + $0x8] sm:$0xff]  ;;  %v2266_v15 = vld [vmem:[#allocation26 + $0xd0] sm:$0xff]  ;;  %1767 = vmatpush.bf16.msrb.mxu3 %v2258_v14 }
0x103e   :  { %v2274_v46 = vld [vmem:[#allocation28 + $0x10] sm:$0xff] }
0x103f   :  { %v1310_v49 = vadd.f32 %v2336_v16, %v1305_v18  ;;  %v2240_v16 = vld [vmem:[#allocation26] sm:$0xff]  ;;  %v2257_v18 = vld [vmem:[#allocation26 + $0x88] sm:$0xff] }
0x1040   :  { %1738 = vmatpush.bf16.msra.mxu0 %v2245_v52 }
0x1041   :  { %v1312_v20 = vrot.slane %v1310_v49, 7  ;;  %v2265_v49 = vld [vmem:[#allocation26 + $0xc8] sm:$0xff]  ;;  %1768 = vmatpush.bf16.msrb.mxu3 %v2257_v18 }
0x1043   :  { %v1315_v21 = vsel %vm1314_vm4, %v1309_v19, %v1312_v20  ;;  %v2256_v19 = vld [vmem:[#allocation26 + $0x80] sm:$0xff] }
0x1044   :  { %v1316_v50 = vpack.c.bf16 %v1315_v21, %v1315_v21  ;;  %1739 = vmatpush.bf16.msra.mxu0 %v2244_v56  ;;  %v2264_v20 = vld [vmem:[#allocation26 + $0xc0] sm:$0xff]  ;;  %v2279_v21 = vld [vmem:[#allocation28 + $0x38] sm:$0xff] }
0x1045   :  { %1769 = vmatpush.bf16.msrb.mxu3 %v2256_v19 }
0x1046   :  { %2013 = vmatmul.msk.bf16.vlgmr.msra.gmra.mxu2 %vm341_vm0, %v1316_v50  ;;  %v2278_v50 = vld [vmem:[#allocation28 + $0x30] sm:$0xff] }
0x1047   :  { %1775 = vmatpush.bf16.msra.mxu2 %v2271_v45  ;;  %v2275_v45 = vld [vmem:[#allocation28 + $0x18] sm:$0xff] }
0x1048   :  { %1740 = vmatpush.bf16.msra.mxu0 %v2243_v60 }
0x104b   :  { %1776 = vmatpush.bf16.msra.mxu2 %v2270_v51 }
0x104c   :  { %1741 = vmatpush.bf16.msra.mxu0 %v2242_v2 }
0x104f   :  { %1777 = vmatpush.bf16.msra.mxu2 %v2269_v55 }
0x1050   :  { %1742 = vmatpush.bf16.msra.mxu0 %v2241_v10 }
0x1053   :  { %1778 = vmatpush.bf16.msra.mxu2 %v2268_v59 }
0x1054   :  { %1743 = vmatpush.bf16.msra.mxu0 %v2240_v16 }
0x1057   :  { %1779 = vmatpush.bf16.msra.mxu2 %v2267_v0 }
0x105b   :  { %1780 = vmatpush.bf16.msra.mxu2 %v2266_v15 }
0x105f   :  { %1781 = vmatpush.bf16.msra.mxu2 %v2265_v49 }
0x1063   :  { %1782 = vmatpush.bf16.msra.mxu2 %v2264_v20 }
0x10c9   :  { %v1349_v5 = vpop.f32.mrf.mxu2 }
0x10ca   :  { %v1350_v8 = vadd.f32 %v2337_v1, %v1349_v5 }
0x10cc   :  { %2402 = vtanh.f32 %v1350_v8 }
0x10d1   :  { %v1351_v9 = vpop.f32.mrf.mxu2 }
0x10d2   :  { %v2403_v11 = vpop.eup %2402 }
0x10d3   :  { %v1354_v12 = vpack.c.bf16 %v2403_v11, %v2403_v11 }
0x10d5   :  { %2046 = vmatmul.msk.bf16.vlgmr.msrb.gmra.mxu0 %vm341_vm0, %v1354_v12  ;;  %2047 = vmatmul.msk.bf16.vlgmr.msrb.gmra.mxu1 %vm341_vm0, %v1354_v12 }
0x10d6   :  { %2048 = vmatmul.msk.bf16.vlgmr.msra.gmra.mxu3 %vm341_vm0, %v1354_v12  ;;  %2049 = vmatmul.msk.bf16.vlgmr.msrb.gmra.mxu2 %vm341_vm0, %v1354_v12 }
0x10d7   :  { %1858 = vmatpush.bf16.msrb.mxu0 %v2279_v21 }
0x10db   :  { %1859 = vmatpush.bf16.msrb.mxu0 %v2278_v50 }
0x10df   :  { %1860 = vmatpush.bf16.msrb.mxu0 %v2277_v22 }
0x10e3   :  { %1861 = vmatpush.bf16.msrb.mxu0 %v2276_v44 }
0x10e7   :  { %1862 = vmatpush.bf16.msrb.mxu0 %v2275_v45 }
0x10eb   :  { %1863 = vmatpush.bf16.msrb.mxu0 %v2274_v46 }
0x10ef   :  { %1864 = vmatpush.bf16.msrb.mxu0 %v2273_v47 }
0x10f3   :  { %1865 = vmatpush.bf16.msrb.mxu0 %v2272_v48 }
0x1152   :  { %v1425_v26 = vpop.f32.mrf.mxu0  ;;  %v1438_v27 = vpop.f32.mrf.mxu1 }
0x1153   :  { %v1426_v28 = vadd.f32 %v1425_v26, %v1365_v24  ;;  %v1439_v29 = vadd.f32 %v1438_v27, %v1366_v25 }
0x1155   :  { %v1468_v30 = vmax.f32 %v1426_v28, 0.0  ;;  %v1469_v31 = vmax.f32 %v1439_v29, 0.0 }
0x1157   :  { %v1472_v6 = vpack.c.bf16 %v1468_v30, %v1468_v30  ;;  %v1473_v63 = vpack.c.bf16 %v1469_v31, %v1469_v31 }
0x1159   :  { %v1451_v34 = vpop.f32.mrf.mxu3  ;;  %v1464_v35 = vpop.f32.mrf.mxu2  ;;  %1744 = vmatmul.bf16.vlgmr.msra.gmra.mxu0 %v1472_v6  ;;  %1757 = vmatmul.bf16.vlgmr.msra.gmra.mxu1 %v1473_v63 }
0x115a   :  { %v1452_v7 = vadd.f32 %v1451_v34, %v1367_v32  ;;  %v1465_v36 = vadd.f32 %v1464_v35, %v1368_v33  ;;  %v1427_v37 = vpop.f32.mrf.mxu0  ;;  %v1440_v3 = vpop.f32.mrf.mxu1 }
0x115c   :  { %v1470_v38 = vmax.f32 %v1452_v7, 0.0  ;;  %v1471_v39 = vmax.f32 %v1465_v36, 0.0 }
0x115e   :  { %v1474_v40 = vpack.c.bf16 %v1470_v38, %v1470_v38  ;;  %v1475_v41 = vpack.c.bf16 %v1471_v39, %v1471_v39 }
0x1160   :  { %1770 = vmatmul.bf16.vlgmr.msrb.gmra.mxu3 %v1474_v40  ;;  %1783 = vmatmul.bf16.vlgmr.msra.gmra.mxu2 %v1475_v41 }
0x1161   :  { %v1453_v42 = vpop.f32.mrf.mxu3  ;;  %v1466_v43 = vpop.f32.mrf.mxu2 }
0x11d6   :  { %v1745_v51 = vpop.f32.mrf.mxu0  ;;  %v1758_v52 = vpop.f32.mrf.mxu1 }
0x11d7   :  { %v1746_v54 = vadd.f32 %v2338_v53, %v1745_v51 }
0x11d9   :  { %v1759_v57 = vadd.f32 %v1758_v52, %v1746_v54 }
0x11de   :  { %v1747_v55 = vpop.f32.mrf.mxu0  ;;  %v1760_v56 = vpop.f32.mrf.mxu1 }
0x11e3   :  { %v1771_v58 = vpop.f32.mrf.mxu3  ;;  %v1784_v59 = vpop.f32.mrf.mxu2 }
0x11e4   :  { %v1772_v60 = vadd.f32 %v1771_v58, %v1759_v57 }
0x11e6   :  { %v1785_v61 = vadd.f32 %v1784_v59, %v1772_v60 }
0x11e8   :  { %v1788_v62 = vmax.f32 %v1785_v61, 0.0 }
0x11ea   :  { %v1789_v0 = vpack.c.bf16 %v1788_v62, %v1788_v62 }
0x11eb   :  { %v1773_v1 = vpop.f32.mrf.mxu3  ;;  %v1786_v2 = vpop.f32.mrf.mxu2 }
0x11ec   :  { %1866 = vmatmul.bf16.vlgmr.msrb.gmra.mxu0 %v1789_v0 }
0x1269   :  { %v1867_v5 = vpop.f32.mrf.mxu0 }
0x126a   :  { %v1868_v8 = vadd.f32 %v2339_v4, %v1867_v5 }
0x126c   :  { %1871 = vst [vmem:[#allocation29] sm:$0x3] %v1868_v8 }
0x126d   :  { %1882 = dma.vmem_to_hbm [thread:$0]  %s1878_s27, 32, %s1880_s13, [#allocation4]  }
0x1271   :  { %v1869_v9 = vpop.f32.mrf.mxu0 }
0x1272   :  { %2854 = dma.done.wait [#allocation4], 32  }
0x1273   :  { %2855 = vsyncadd [#allocation4], 4294967264 }
0x1274   :  { %1887 = vsyncpa [#allocation3], 1 }
0x1275   :  { %1888 = vsyncpa [#allocation6], 1 }
0x1276   :  { %1889 = vsyncpa [#allocation9], 1 }
0x1277   :  { %1890 = vsyncpa [#allocation12], 1 }
0x1278   :  { %1891 = vsyncpa [#allocation15], 1 }
0x1279   :  { %1892 = vsyncpa [#allocation18], 1 }
0x127a   :  { %1893 = vsyncpa [#allocation21], 1 }
0x127b   :  { %1894 = vsyncpa [#allocation24], 1 }
0x127c   :  { %1895 = vsyncpa [#allocation27], 1 }
0x127d   :  { %1896 = vsyncpa [#allocation4], 1 }

</bundles_post_ra>
